<compile_context>
chip_gen: v7x
topology: tpu7x:2x2x1
jax: 0.10.0
libtpu: 0.0.40
codegen_flags: <defaults>
</compile_context>

<pallas_src>
import math

import jax
import jax.numpy as jnp
from jax import lax
from jax.experimental import pallas as pl
from jax.experimental.pallas import tpu as pltpu

NUM_HEADS = 12
HIDDEN = 768
HEAD_DIM = HIDDEN // NUM_HEADS            # 64
HEADS_PER_BLOCK = 2                        # -> 128-lane aligned slabs
HEAD_BLOCK = HEADS_PER_BLOCK * HEAD_DIM    # 128
NUM_HEAD_BLOCKS = NUM_HEADS // HEADS_PER_BLOCK  # 6


def _coattn_kernel(s1_ref, s2_ref, mask_ref,
                   wq_ref, bq_ref, wkv_ref, bkv_ref,
                   out_ref):
    # Shapes seen by the kernel for grid point (hb, b):
    #   s1_ref   : (1, S1, D)           s2_ref  : (1, S2, D)
    #   mask_ref : (1, 1, 1, S2)
    #   wq_ref   : (D, 128)   bf16      bq_ref  : (1, 128)   f32 (scale folded)
    #   wkv_ref  : (D, 256)   bf16      bkv_ref : (1, 256)   f32
    #   out_ref  : (1, S1, 128)
    s1 = s1_ref[0].astype(jnp.bfloat16)      # (S1, D)
    s2 = s2_ref[0].astype(jnp.bfloat16)      # (S2, D)
    mask = mask_ref[0, 0]                    # (1, S2) additive BERT mask (f32)

    # Projections for the 2 heads of this block; bf16 x bf16 -> f32 accum.
    # 1/sqrt(HEAD_DIM) is already folded into wq/bq.
    q = jnp.dot(s1, wq_ref[...], preferred_element_type=jnp.float32) + bq_ref[...]     # (S1, 128)
    kv = jnp.dot(s2, wkv_ref[...], preferred_element_type=jnp.float32) + bkv_ref[...]  # (S2, 256)

    ctx_halves = []
    for h in range(HEADS_PER_BLOCK):
        lo = h * HEAD_DIM
        qh = q[:, lo:lo + HEAD_DIM]                              # (S1, Dh)
        kh = kv[:, lo:lo + HEAD_DIM]                             # (S2, Dh)
        vh = kv[:, HEAD_BLOCK + lo:HEAD_BLOCK + lo + HEAD_DIM]   # (S2, Dh)

        # q @ k^T via dot_general contracting last dims (no XLU transpose of K).
        scores = lax.dot_general(qh, kh, (((1,), (1,)), ((), ())),
                                 preferred_element_type=jnp.float32)  # (S1, S2)
        scores = scores + mask

        # Numerically-stable softmax along the key axis (exact reciprocal).
        m = jnp.max(scores, axis=-1, keepdims=True)
        p = jnp.exp(scores - m)
        denom = jnp.sum(p, axis=-1, keepdims=True)
        probs = p / denom                                        # (S1, S2)

        # TODO(synk): nn.Dropout(0.1) is identity in eval mode; a training-mode
        # path would need pltpu.prng_seed / prng_random_bits sampling here.
        ctx_halves.append(jnp.dot(probs, vh, preferred_element_type=jnp.float32))

    # One full 128-lane aligned store for both heads of this block.
    out_ref[0] = jnp.concatenate(ctx_halves, axis=-1).astype(out_ref.dtype)


def prepare_params(params):
    """One-time param transform: scale-fold, bf16 weights, K|V column fusion.

    params: wq/wk/wv (HIDDEN, HIDDEN) already laid out so y = x @ w + b,
            bq/bk/bv (HIDDEN,), all float32.
    """
    scale = 1.0 / math.sqrt(HEAD_DIM)
    wq = (params["wq"] * scale).astype(jnp.bfloat16)                        # (D, D)
    bq = (params["bq"] * scale).reshape(1, HIDDEN).astype(jnp.float32)      # (1, D)

    # Interleave K|V output columns per 128-wide head-block so each grid step
    # reads one contiguous (D, 256) slab: [k_cols(hb) | v_cols(hb)].
    wk = params["wk"].astype(jnp.bfloat16).reshape(HIDDEN, NUM_HEAD_BLOCKS, HEAD_BLOCK)
    wv = params["wv"].astype(jnp.bfloat16).reshape(HIDDEN, NUM_HEAD_BLOCKS, HEAD_BLOCK)
    wkv = jnp.concatenate([wk, wv], axis=-1).reshape(HIDDEN, 2 * HIDDEN)    # (D, 1536)

    bk = params["bk"].reshape(NUM_HEAD_BLOCKS, HEAD_BLOCK)
    bv = params["bv"].reshape(NUM_HEAD_BLOCKS, HEAD_BLOCK)
    bkv = jnp.concatenate([bk, bv], axis=-1).reshape(1, 2 * HIDDEN).astype(jnp.float32)

    return {"wq": wq, "bq": bq, "wkv": wkv, "bkv": bkv}


@jax.jit
def bert_co_attention(s1_hidden_states, s2_hidden_states, s2_attention_mask, prepped):
    B, S1, D = s1_hidden_states.shape
    _, S2, _ = s2_hidden_states.shape
    assert D == HIDDEN

    # Grid: head-block OUTER, batch INNER -> weight slabs keep a constant block
    # index across the inner batch loop (fetched once per head-block), while
    # activation blocks stream per batch element.
    grid = (NUM_HEAD_BLOCKS, B)

    in_specs = [
        pl.BlockSpec((1, S1, D), lambda hb, b: (b, 0, 0)),
        pl.BlockSpec((1, S2, D), lambda hb, b: (b, 0, 0)),
        pl.BlockSpec((1, 1, 1, S2), lambda hb, b: (b, 0, 0, 0)),
        pl.BlockSpec((D, HEAD_BLOCK), lambda hb, b: (0, hb)),        # wq slab (bf16)
        pl.BlockSpec((1, HEAD_BLOCK), lambda hb, b: (0, hb)),        # bq slab
        pl.BlockSpec((D, 2 * HEAD_BLOCK), lambda hb, b: (0, hb)),    # fused k|v slab (bf16)
        pl.BlockSpec((1, 2 * HEAD_BLOCK), lambda hb, b: (0, hb)),    # fused bias slab
    ]
    out_specs = pl.BlockSpec((1, S1, HEAD_BLOCK), lambda hb, b: (b, 0, hb))

    return pl.pallas_call(
        _coattn_kernel,
        out_shape=jax.ShapeDtypeStruct((B, S1, D), s1_hidden_states.dtype),
        grid_spec=pltpu.PrefetchScalarGridSpec(
            num_scalar_prefetch=0,
            grid=grid,
            in_specs=in_specs,
            out_specs=out_specs,
        ),
        compiler_params=pltpu.CompilerParams(
            # Both axes independent (no cross-step accumulator); on v7x the two
            # TensorCores split the head-block axis even when B == 1.
            dimension_semantics=("parallel", "parallel"),
        ),
    )(s1_hidden_states, s2_hidden_states, s2_attention_mask,
      prepped["wq"], prepped["bq"], prepped["wkv"], prepped["bkv"])


def _reference(s1, s2, mask, params):
    """Pure-JAX reference mirroring the PyTorch forward (dropout in eval mode),
    using the same bf16 weight/activation quantization as the kernel so the
    comparison isolates kernel correctness from the intended precision change."""
    B, S1, _ = s1.shape
    H, Dh = NUM_HEADS, HEAD_DIM
    scale = 1.0 / math.sqrt(Dh)

    wq = (params["wq"] * scale).astype(jnp.bfloat16)
    wk = params["wk"].astype(jnp.bfloat16)
    wv = params["wv"].astype(jnp.bfloat16)
    bq = (params["bq"] * scale).astype(jnp.float32)
    bk = params["bk"]
    bv = params["bv"]

    q = jnp.dot(s1.astype(jnp.bfloat16), wq, preferred_element_type=jnp.float32) + bq
    k = jnp.dot(s2.astype(jnp.bfloat16), wk, preferred_element_type=jnp.float32) + bk
    v = jnp.dot(s2.astype(jnp.bfloat16), wv, preferred_element_type=jnp.float32) + bv

    def split(x):
        Bx, Sx, _ = x.shape
        return jnp.transpose(x.reshape(Bx, Sx, H, Dh), (0, 2, 1, 3))

    q, k, v = split(q), split(k), split(v)
    scores = jnp.einsum("bhqd,bhkd->bhqk", q, k) + mask   # scale already folded into q
    probs = jax.nn.softmax(scores, axis=-1)
    ctx = jnp.einsum("bhqk,bhkd->bhqd", probs, v)
    return jnp.transpose(ctx, (0, 2, 1, 3)).reshape(B, S1, H * Dh)


if __name__ == "__main__":
    key = jax.random.PRNGKey(0)
    ks = jax.random.split(key, 9)

    B, S1, S2 = 2, 16, 24

    # Deterministic synthetic parameters (no checkpoint load).
    w_scale = 1.0 / math.sqrt(HIDDEN)
    params = {
        "wq": jax.random.normal(ks[0], (HIDDEN, HIDDEN), jnp.float32) * w_scale,
        "bq": jax.random.normal(ks[1], (HIDDEN,), jnp.float32) * 0.02,
        "wk": jax.random.normal(ks[2], (HIDDEN, HIDDEN), jnp.float32) * w_scale,
        "bk": jax.random.normal(ks[3], (HIDDEN,), jnp.float32) * 0.02,
        "wv": jax.random.normal(ks[4], (HIDDEN, HIDDEN), jnp.float32) * w_scale,
        "bv": jax.random.normal(ks[5], (HIDDEN,), jnp.float32) * 0.02,
    }

    s1_hidden = jax.random.normal(ks[6], (B, S1, HIDDEN), jnp.float32)
    s2_hidden = jax.random.normal(ks[7], (B, S2, HIDDEN), jnp.float32)

    # Standard BERT additive mask: 0 for keep, -10000 for masked positions.
    keep = (jax.random.uniform(ks[8], (B, S2)) > 0.2).astype(jnp.float32)
    s2_mask = ((1.0 - keep) * -10000.0).reshape(B, 1, 1, S2)

    prepped = prepare_params(params)
    out = bert_co_attention(s1_hidden, s2_hidden, s2_mask, prepped)
    out = jax.block_until_ready(out)

    ref = _reference(s1_hidden, s2_hidden, s2_mask, params)
    assert out.shape == (B, S1, HIDDEN)
    # Both sides use bf16-quantized projections with f32 accumulation; the only
    # residual difference is accumulation order (MXU vs XLA), so tight tolerance.
    assert jnp.allclose(out, ref, atol=2e-3, rtol=2e-3), "mismatch vs reference"

    print("KERNEL_OK")
</pallas_src>

<mosaic_0001>
module attributes {stable_mosaic.version = 11 : i64} {
  func.func @_coattn_kernel(%arg0: i32, %arg1: i32, %arg2: memref<1x16x768xf32, #tpu.memory_space<vmem>>, %arg3: memref<1x24x768xf32, #tpu.memory_space<vmem>>, %arg4: memref<1x1x1x24xf32, #tpu.memory_space<vmem>>, %arg5: memref<768x128xbf16, #tpu.memory_space<vmem>>, %arg6: memref<1x128xf32, #tpu.memory_space<vmem>>, %arg7: memref<768x256xbf16, #tpu.memory_space<vmem>>, %arg8: memref<1x256xf32, #tpu.memory_space<vmem>>, %arg9: memref<1x16x128xf32, #tpu.memory_space<vmem>>) attributes {dimension_semantics = [#tpu.dimension_semantics<parallel>, #tpu.dimension_semantics<parallel>], iteration_bounds = array<i64: 6, 2>, scalar_prefetch = 0 : i64, scratch_operands = 0 : i64, tpu.core_type = #tpu.core_type<tc>, window_params = [{transform_indices = @transform_0, window_bounds = array<i64: 1, 16, 768>}, {transform_indices = @transform_1, window_bounds = array<i64: 1, 24, 768>}, {transform_indices = @transform_2, window_bounds = array<i64: 1, 1, 1, 24>}, {transform_indices = @transform_3, window_bounds = array<i64: 768, 128>}, {transform_indices = @transform_4, window_bounds = array<i64: 1, 128>}, {transform_indices = @transform_5, window_bounds = array<i64: 768, 256>}, {transform_indices = @transform_6, window_bounds = array<i64: 1, 256>}, {transform_indices = @transform_7, window_bounds = array<i64: 1, 16, 128>}]} {
    %c0 = arith.constant 0 : index
    %c0_0 = arith.constant 0 : index
    %c0_1 = arith.constant 0 : index
    %0 = vector.load %arg2[%c0, %c0_0, %c0_1] : memref<1x16x768xf32, #tpu.memory_space<vmem>>, vector<1x16x768xf32>
    %1 = vector.shape_cast %0 : vector<1x16x768xf32> to vector<16x768xf32>
    %2 = arith.truncf %1 : vector<16x768xf32> to vector<16x768xbf16>
    %c0_2 = arith.constant 0 : index
    %c0_3 = arith.constant 0 : index
    %c0_4 = arith.constant 0 : index
    %3 = vector.load %arg3[%c0_2, %c0_3, %c0_4] : memref<1x24x768xf32, #tpu.memory_space<vmem>>, vector<1x24x768xf32>
    %4 = vector.shape_cast %3 : vector<1x24x768xf32> to vector<24x768xf32>
    %5 = arith.truncf %4 : vector<24x768xf32> to vector<24x768xbf16>
    %c0_5 = arith.constant 0 : index
    %c0_6 = arith.constant 0 : index
    %c0_7 = arith.constant 0 : index
    %c0_8 = arith.constant 0 : index
    %6 = vector.load %arg4[%c0_5, %c0_6, %c0_7, %c0_8] : memref<1x1x1x24xf32, #tpu.memory_space<vmem>>, vector<1x1x1x24xf32>
    %7 = vector.shape_cast %6 : vector<1x1x1x24xf32> to vector<1x24xf32>
    %c0_9 = arith.constant 0 : index
    %c0_10 = arith.constant 0 : index
    %8 = vector.load %arg5[%c0_9, %c0_10] : memref<768x128xbf16, #tpu.memory_space<vmem>>, vector<768x128xbf16>
    %cst = arith.constant dense<0.000000e+00> : vector<16x128xf32>
    %9 = tpu.matmul %2, %8, %cst {dimension_numbers = #tpu.dot_dimension_numbers<[1], [0], [0], [1], [0, 0, 1, 1], [], []>} : vector<16x768xbf16>, vector<768x128xbf16>, vector<16x128xf32> -> vector<16x128xf32>
    %c0_11 = arith.constant 0 : index
    %c0_12 = arith.constant 0 : index
    %10 = vector.load %arg6[%c0_11, %c0_12] : memref<1x128xf32, #tpu.memory_space<vmem>>, vector<1x128xf32>
    %11 = vector.broadcast %10 : vector<1x128xf32> to vector<16x128xf32>
    %12 = arith.addf %9, %11 : vector<16x128xf32>
    %c0_13 = arith.constant 0 : index
    %c0_14 = arith.constant 0 : index
    %13 = vector.load %arg7[%c0_13, %c0_14] : memref<768x256xbf16, #tpu.memory_space<vmem>>, vector<768x256xbf16>
    %cst_15 = arith.constant dense<0.000000e+00> : vector<24x256xf32>
    %14 = tpu.matmul %5, %13, %cst_15 {dimension_numbers = #tpu.dot_dimension_numbers<[1], [0], [0], [1], [0, 0, 1, 1], [], []>} : vector<24x768xbf16>, vector<768x256xbf16>, vector<24x256xf32> -> vector<24x256xf32>
    %c0_16 = arith.constant 0 : index
    %c0_17 = arith.constant 0 : index
    %15 = vector.load %arg8[%c0_16, %c0_17] : memref<1x256xf32, #tpu.memory_space<vmem>>, vector<1x256xf32>
    %16 = vector.broadcast %15 : vector<1x256xf32> to vector<24x256xf32>
    %17 = arith.addf %14, %16 : vector<24x256xf32>
    %18 = vector.extract_strided_slice %12 {offsets = [0, 0], sizes = [16, 64], strides = [1, 1]} : vector<16x128xf32> to vector<16x64xf32>
    %19 = vector.extract_strided_slice %17 {offsets = [0, 0], sizes = [24, 64], strides = [1, 1]} : vector<24x256xf32> to vector<24x64xf32>
    %20 = vector.extract_strided_slice %17 {offsets = [0, 128], sizes = [24, 64], strides = [1, 1]} : vector<24x256xf32> to vector<24x64xf32>
    %cst_18 = arith.constant dense<0.000000e+00> : vector<16x24xf32>
    %21 = tpu.matmul %18, %19, %cst_18 {dimension_numbers = #tpu.dot_dimension_numbers<[1], [1], [0], [0], [0, 0, 1, 0], [], []>} : vector<16x64xf32>, vector<24x64xf32>, vector<16x24xf32> -> vector<16x24xf32>
    %22 = vector.broadcast %7 : vector<1x24xf32> to vector<16x24xf32>
    %23 = arith.addf %21, %22 : vector<16x24xf32>
    %cst_19 = arith.constant dense<0xFF800000> : vector<16xf32>
    %24 = vector.multi_reduction <maximumf>, %23, %cst_19 [1] : vector<16x24xf32> to vector<16xf32>
    %25 = vector.shape_cast %24 : vector<16xf32> to vector<16x1xf32>
    %26 = vector.broadcast %25 : vector<16x1xf32> to vector<16x24xf32>
    %27 = arith.subf %23, %26 : vector<16x24xf32>
    %28 = math.exp %27 : vector<16x24xf32>
    %cst_20 = arith.constant dense<0.000000e+00> : vector<16xf32>
    %29 = vector.multi_reduction <add>, %28, %cst_20 [1] : vector<16x24xf32> to vector<16xf32>
    %30 = vector.shape_cast %29 : vector<16xf32> to vector<16x1xf32>
    %31 = vector.broadcast %30 : vector<16x1xf32> to vector<16x24xf32>
    %32 = arith.divf %28, %31 : vector<16x24xf32>
    %cst_21 = arith.constant dense<0.000000e+00> : vector<16x64xf32>
    %33 = tpu.matmul %32, %20, %cst_21 {dimension_numbers = #tpu.dot_dimension_numbers<[1], [0], [0], [1], [0, 0, 1, 1], [], []>} : vector<16x24xf32>, vector<24x64xf32>, vector<16x64xf32> -> vector<16x64xf32>
    %34 = vector.extract_strided_slice %12 {offsets = [0, 64], sizes = [16, 64], strides = [1, 1]} : vector<16x128xf32> to vector<16x64xf32>
    %35 = vector.extract_strided_slice %17 {offsets = [0, 64], sizes = [24, 64], strides = [1, 1]} : vector<24x256xf32> to vector<24x64xf32>
    %36 = vector.extract_strided_slice %17 {offsets = [0, 192], sizes = [24, 64], strides = [1, 1]} : vector<24x256xf32> to vector<24x64xf32>
    %cst_22 = arith.constant dense<0.000000e+00> : vector<16x24xf32>
    %37 = tpu.matmul %34, %35, %cst_22 {dimension_numbers = #tpu.dot_dimension_numbers<[1], [1], [0], [0], [0, 0, 1, 0], [], []>} : vector<16x64xf32>, vector<24x64xf32>, vector<16x24xf32> -> vector<16x24xf32>
    %38 = vector.broadcast %7 : vector<1x24xf32> to vector<16x24xf32>
    %39 = arith.addf %37, %38 : vector<16x24xf32>
    %cst_23 = arith.constant dense<0xFF800000> : vector<16xf32>
    %40 = vector.multi_reduction <maximumf>, %39, %cst_23 [1] : vector<16x24xf32> to vector<16xf32>
    %41 = vector.shape_cast %40 : vector<16xf32> to vector<16x1xf32>
    %42 = vector.broadcast %41 : vector<16x1xf32> to vector<16x24xf32>
    %43 = arith.subf %39, %42 : vector<16x24xf32>
    %44 = math.exp %43 : vector<16x24xf32>
    %cst_24 = arith.constant dense<0.000000e+00> : vector<16xf32>
    %45 = vector.multi_reduction <add>, %44, %cst_24 [1] : vector<16x24xf32> to vector<16xf32>
    %46 = vector.shape_cast %45 : vector<16xf32> to vector<16x1xf32>
    %47 = vector.broadcast %46 : vector<16x1xf32> to vector<16x24xf32>
    %48 = arith.divf %44, %47 : vector<16x24xf32>
    %cst_25 = arith.constant dense<0.000000e+00> : vector<16x64xf32>
    %49 = tpu.matmul %48, %36, %cst_25 {dimension_numbers = #tpu.dot_dimension_numbers<[1], [0], [0], [1], [0, 0, 1, 1], [], []>} : vector<16x24xf32>, vector<24x64xf32>, vector<16x64xf32> -> vector<16x64xf32>
    %50 = tpu.concatenate %33, %49 in 1 : vector<16x64xf32>, vector<16x64xf32> -> vector<16x128xf32>
    %c0_26 = arith.constant 0 : index
    %c0_27 = arith.constant 0 : index
    %c0_28 = arith.constant 0 : index
    %51 = vector.load %arg9[%c0_26, %c0_27, %c0_28] : memref<1x16x128xf32, #tpu.memory_space<vmem>>, vector<1x16x128xf32>
    %52 = vector.shape_cast %51 : vector<1x16x128xf32> to vector<16x128xf32>
    %53 = vector.shape_cast %50 : vector<16x128xf32> to vector<1x16x128xf32>
    tpu.vector_store %arg9[%c0_26, %c0_27, %c0_28], %53 {strides = array<i32>} : memref<1x16x128xf32, #tpu.memory_space<vmem>>, vector<1x16x128xf32>,
    return
  }
  func.func @transform_0(%arg0: i32, %arg1: i32) -> (i32, i32, i32) {
    %c0_i32 = arith.constant 0 : i32
    %c0_i32_0 = arith.constant 0 : i32
    %c0_i32_1 = arith.constant 0 : i32
    return %arg1, %c0_i32, %c0_i32_0 : i32, i32, i32
  }
  func.func @transform_1(%arg0: i32, %arg1: i32) -> (i32, i32, i32) {
    %c0_i32 = arith.constant 0 : i32
    %c0_i32_0 = arith.constant 0 : i32
    %c0_i32_1 = arith.constant 0 : i32
    return %arg1, %c0_i32, %c0_i32_0 : i32, i32, i32
  }
  func.func @transform_2(%arg0: i32, %arg1: i32) -> (i32, i32, i32, i32) {
    %c0_i32 = arith.constant 0 : i32
    %c0_i32_0 = arith.constant 0 : i32
    %c0_i32_1 = arith.constant 0 : i32
    %c0_i32_2 = arith.constant 0 : i32
    return %arg1, %c0_i32, %c0_i32_0, %c0_i32_1 : i32, i32, i32, i32
  }
  func.func @transform_3(%arg0: i32, %arg1: i32) -> (i32, i32) {
    %c0_i32 = arith.constant 0 : i32
    %c0_i32_0 = arith.constant 0 : i32
    return %c0_i32, %arg0 : i32, i32
  }
  func.func @transform_4(%arg0: i32, %arg1: i32) -> (i32, i32) {
    %c0_i32 = arith.constant 0 : i32
    %c0_i32_0 = arith.constant 0 : i32
    return %c0_i32, %arg0 : i32, i32
  }
  func.func @transform_5(%arg0: i32, %arg1: i32) -> (i32, i32) {
    %c0_i32 = arith.constant 0 : i32
    %c0_i32_0 = arith.constant 0 : i32
    return %c0_i32, %arg0 : i32, i32
  }
  func.func @transform_6(%arg0: i32, %arg1: i32) -> (i32, i32) {
    %c0_i32 = arith.constant 0 : i32
    %c0_i32_0 = arith.constant 0 : i32
    return %c0_i32, %arg0 : i32, i32
  }
  func.func @transform_7(%arg0: i32, %arg1: i32) -> (i32, i32, i32) {
    %c0_i32 = arith.constant 0 : i32
    %c0_i32_0 = arith.constant 0 : i32
    return %arg1, %c0_i32, %arg0 : i32, i32, i32
  }
}

</mosaic_0001>

<bundles_post_ra>
// kernel: bert_co_attention.1
= control target key start
LH: loop header
LB: loop body
LE: loop exit
PB: predicated region body
PF: predicated region fallthrough
CT: control target
= control target key end

     0   :  { %s4427_s0 = inlined_call_operand.hbm [shape: f32[2,16,768], index: 0, kind: input, shape index: {}]   ;;  %s4428_s1 = inlined_call_operand.hbm [shape: f32[2,24,768], index: 1, kind: input, shape index: {}]   ;;  %s4429_s2 = inlined_call_operand.hbm [shape: f32[2,1,1,24], index: 2, kind: input, shape index: {}]   ;;  %s4430_s3 = inlined_call_operand.hbm [shape: bf16[768,768], index: 3, kind: input, shape index: {}]   ;;  %s4431_s4 = inlined_call_operand.hbm [shape: f32[1,768], index: 4, kind: input, shape index: {}]   ;;  %s4432_s5 = inlined_call_operand.hbm [shape: bf16[768,1536], index: 5, kind: input, shape index: {}]   ;;  %s4433_s6 = inlined_call_operand.hbm [shape: f32[1,1536], index: 6, kind: input, shape index: {}]   ;;  %s4434_s7 = inlined_call_operand.hbm [shape: f32[2,16,768], index: 7, kind: output, shape index: {}]  }
   0x1   :  { %4472 = sst [smem:[#allocation40_spill]] %s4428_s1 }
   0x2   :  { %4473 = sst [smem:[#allocation41_spill]] %s4430_s3 }
   0x3   :  { %4474 = sst [smem:[#allocation42_spill]] %s4432_s5 }
   0x4   :  { %4475 = sst [smem:[#allocation43_spill]] %s4434_s7 }
   0x5   :  { %12 = vsyncpa [#allocation3], 0 }
   0x6   :  { %14 = vsyncpa [#allocation3 + $0x1], 0 }
   0x7   :  { %15 = vsyncpa [#allocation6], 0 }
   0x8   :  { %17 = vsyncpa [#allocation6 + $0x1], 0 }
   0x9   :  { %18 = vsyncpa [#allocation9], 0 }
   0xa   :  { %20 = vsyncpa [#allocation9 + $0x1], 0 }
   0xb   :  { %21 = vsyncpa [#allocation12], 0 }
   0xc   :  { %23 = vsyncpa [#allocation12 + $0x1], 0 }
   0xd   :  { %24 = vsyncpa [#allocation4], 0 }
   0xe   :  { %26 = vsyncpa [#allocation4 + $0x1], 0  ;;  %s3651_s24 = smov 0   ;;  %s3653_s25 = smov 0  }
   0xf   :  { %s3655_s26 = smov 0   ;;  %s3657_s27 = smov 0  }
  0x10   :  { %s3659_s28 = smov 0   ;;  %s3661_s29 = smov 0  }
  0x11   :  { %s3663_s30 = smov 0   ;;  %s3665_s8 = smov 0  }
  0x12   :  { %s3667_s9 = smov 0   ;;  %s3669_s10 = smov 0  }
  0x13   :  { %s3671_s11 = smov 0   ;;  %s3673_s12 = smov 0  }
  0x14   :  { %s3675_s13 = smov 0   ;;  %s3677_s14 = smov 0  }
  0x15 LB: > { %4476 = sst [smem:[#allocation20_spill]] %s3538_s24  ;;  %s3720_s15 = sadd.s32 4294967295, %s3590_s14   ;;  %s3590_s14 = sphi %s3677_s14, %s32_s14   ;;  %s3586_s13 = sphi %s3675_s13, %s4564_s13   ;;  %s3582_s12 = sphi %s3673_s12, %s4563_s12   ;;  %s3578_s11 = sphi %s3671_s11, %s4562_s11   ;;  %s3574_s10 = sphi %s3669_s10, %s4561_s10   ;;  %s3570_s9 = sphi %s3667_s9, %s4556_s9   ;;  %s3566_s8 = sphi %s3665_s8, %s4555_s8   ;;  %s3562_s30 = sphi %s3663_s30, %s4554_s30   ;;  %s3558_s29 = sphi %s3661_s29, %s4553_s29   ;;  %s3554_s28 = sphi %s3659_s28, %s4552_s28   ;;  %s3550_s27 = sphi %s3657_s27, %s4551_s27   ;;  %s3546_s26 = sphi %s3655_s26, %s4550_s26   ;;  %s3542_s25 = sphi %s3653_s25, %s4560_s25   ;;  %s3538_s24 = sphi %s3651_s24, %s4548_s24  }
  0x16   : > { %4477 = sst [smem:[#allocation21_spill]] %s3542_s25  ;;  %s2482_s16 = sadd.s32 4294967294, %s3590_s14  }
  0x17   : > { %4478 = sst [smem:[#allocation22_spill]] %s3546_s26  ;;  %s41_s17 = sadd.s32 1, %s3582_s12 }
  0x18   : > { %4479 = sst [smem:[#allocation23_spill]] %s3554_s28  ;;  %s44_s18 = sadd.s32 1, %s3586_s13 }
  0x19   : > { %4480 = sst [smem:[#allocation24_spill]] %s3558_s29  ;;  %p42_p0 = scmp.ge.s32.totalorder %s41_s17, 2 }
  0x1a   : > { %4481 = sst [smem:[#allocation25_spill]] %s3566_s8  ;;  %s51_s19 = sadd.s32 1, %s3570_s9 }
  0x1b   : > { %4482 = sst [smem:[#allocation26_spill]] %s3570_s9  ;;  %p58_p1 = scmp.ne.s32.totalorder %s3570_s9, %s3566_s8 }
  0x1c   : > { %4483 = sst [smem:[#allocation27_spill]] %s3574_s10  ;;  %p4446_p2 = scmp.eq.s32.totalorder %s3590_s14, 0 }
  0x1d   : > { %4484 = sst [smem:[#allocation28_spill]] %s3578_s11  ;;  %s4566_s17 = smov (%p42_p0, %s41_s17), 0 }
  0x1e   : > { %4485 = sst [smem:[#allocation29_spill]] %s3590_s14  ;;  %s4568_s18 = smov (!%p42_p0, %s44_s18), %s3586_s13 }
  0x1f   : > { %4486 = sst [smem:[#allocation30_spill]] %s3720_s15  ;;  %s48_s20 = ssub.s32 %s3582_s12, %s4566_s17 }
  0x20   : > { %4487 = sst [smem:[#allocation31_spill]] %s4566_s17  ;;  %p3736_p3 = por %p4446_p2, %p58_p1 }
  0x21   : > { %p46_p4 = scmp.ge.s32.totalorder %s4568_s18, 6  ;;  %p49_p5 = scmp.eq.s32.totalorder %s48_s20, 0 }
  0x22   : > { %p64_p6 = scmp.ne.s32.totalorder %s3566_s8, %s3562_s30  ;;  %p4445_p7 = scmp.eq.s32.totalorder %s3720_s15, 0 }
  0x23   : > { %s4570_s18 = smov (%p46_p4, %s4568_s18), 0  ;;  %s235_s7 = sadd.s32 1, %s3546_s26 }
  0x24   : > { %4489 = sst [smem:[#allocation32_spill]] %s4570_s18  ;;  %p3749_p8 = por %p4445_p7, %p64_p6 }
  0x25   : > { %s3745_s22 = scalar_select %p49_p5, %s3570_s9, %s51_s19  }
  0x26   : > { %s4491_s23 = scalar_select %p3749_p8, 1, 0 }
  0x27   : > { %4490 = sst [smem:[#allocation33_spill]] %s3745_s22  ;;  %s3755_s17 = ssub.s32 %s3586_s13, %s4570_s18 }
  0x28   : > { %4492 = sst [smem:[#allocation34_spill]] %s4491_s23  ;;  %s232_s30 = sor.u32 %s3755_s17, %s48_s20 }
  0x29   : > { %p233_p10 = scmp.eq.s32.totalorder %s232_s30, 0  ;;  %p245_p11 = scmp.ne.s32.totalorder %s3546_s26, %s3542_s25 }
  0x2a   : > { %p246_p12 = scmp.eq.s32.totalorder %s3720_s15, 11  ;;  %p251_p0 = scmp.ne.s32.totalorder %s3542_s25, %s3538_s24 }
  0x2b   : > { %s3764_s19 = scalar_select %p233_p10, %s3546_s26, %s235_s7  }
  0x2c   : > { %p3766_p13 = por %p246_p12, %p245_p11  ;;  %p252_p1 = scmp.eq.s32.totalorder %s2482_s16, 11 }
  0x2d   : > { %4493 = sst [smem:[#allocation35_spill]] %s3764_s19  ;;  %p4444_p4 = scmp.lt.s32.totalorder %s3590_s14, 12 }
  0x2e   : > { %s4494_s22 = scalar_select %p3766_p13, 1, 0 }
  0x2f   : > { %s3774_s18 = sand.u32 1, %s3570_s9   ;;  %p3776_p5 = por %p252_p1, %p251_p0 }
  0x30   : > { %4495 = sst [smem:[#allocation36_spill]] %s4494_s22  ;;  %p3784_p6 = pnand %p4444_p4, %p3736_p3 }
  0x31   : > { %s4496_s11 = scalar_select %p3776_p5, 1, 0 }
  0x32   : > { %s4498_s20 = scalar_select %p3784_p6, 1, 0 }
  0x33   : > { %4497 = sst [smem:[#allocation37_spill]] %s4496_s11  ;;  %s3789_s7 = sand.u32 1, %s3590_s14  }
  0x34   : > { %s2828_s30 = smul.u32 144, %s3774_s18  ;;  %s4499_s1 = sld [smem:[#allocation40_spill]] }
  0x35   : > { %s2829_s16 = smul.u32 2304, %s3582_s12  ;;  %p3806_p11 = pneg %p3784_p6 }
  0x36   : > { %s297_s19 = scalar_lea.vmem [#allocation5], %s2828_s30 }
  0x37   : > { %s304_s9 = sshll.u32 %s297_s19, 4  ;;  %s3799_s9 = int_to_ptr.vmem [resolvable:$true] %s304_s9 }
  0x38   : > { %s4500_s10 = scalar_select %p3806_p11, 1, 0 }
  0x3a   : > { %s3797_s22 = scalar_lea.hbm %s4499_s1, %s2829_s16  ;;  %s3227_s19 = scalar_lea.hbm %s4499_s1, 4608 }
  0x3b   : > { %s3222_s11 = scalar_lea.hbm %s3797_s22, 2304  ;;  %p3228_p1 = scmp.lt.u32.totalorder %s3797_s22, %s4499_s1 }
  0x3c   : > { %p3223_p3 = scmp.ne.s32.totalorder %s3797_s22, %s3222_s11  ;;  %p3229_p4 = scmp.lt.u32.totalorder %s3227_s19, %s3222_s11 }
  0x3d   : > { %p3231_p2 = scmp.lt.u32.totalorder %s3222_s11, %s3797_s22 }
  0x3e   : > { %p3225_p12 = pnand %p3806_p11, %p3223_p3  ;;  %p3230_p7 = por %p3229_p4, %p3228_p1 }
  0x40   : > { %p3226_p0 = pneg %p3225_p12  ;;  %p3232_p9 = por %p3231_p2, %p3230_p7 }
  0x42   : > { %p3233_p10 = pnand %p3232_p9, %p3226_p0 }
  0x44   : > { %3236 = shalt.err (!%p3233_p10)
}
  0x45   : > { %s3237_s21 = scalar_lea.vmem %s3799_s9, 2304  ;;  %s3592_s24 = smov [#allocation5]  }
  0x46   : > { %p3238_p3 = scmp.ne.s32.totalorder %s3799_s9, %s3237_s21  ;;  %s3242_s26 = sshll.u32 %s3592_s24, 4  ;;  %s3243_s26 = int_to_ptr.vmem [resolvable:$false] %s3242_s26 }
  0x47   : > { %s3244_s30 = scalar_lea.vmem %s3243_s26, 4608  ;;  %p3245_p13 = scmp.lt.s32.totalorder %s3799_s9, %s3243_s26 }
  0x48   : > { %p3240_p12 = pnand %p3238_p3, %p3806_p11  ;;  %p3246_p8 = scmp.lt.s32.totalorder %s3244_s30, %s3237_s21 }
  0x4a   : > { %p3241_p5 = pneg %p3240_p12  ;;  %p3247_p4 = por %p3246_p8, %p3245_p13 }
  0x4c   : > { %p3248_p1 = pnand %p3247_p4, %p3241_p5 }
  0x4e   : > { %3251 = shalt.err (!%p3248_p1)
}
  0x4f   : > { %s4450_s11 = smov 768   ;;  %s4449_s21 = smov 48  }
  0x50   : > { %s4501_s19 = scalar_lea.sflag [#allocation6], %s3789_s7  ;;  %p406_p2 = scmp.lt.s32.totalorder %s3590_s14, 13 }
  0x51   : > { %2859 = dma.hbm_to_vmem [thread:$0]  (!%p3784_p6), %s3797_s22, 2304, %s3799_s9, %s4501_s19, %s4450_s11, %s4450_s11, %s4449_s21  }
  0x52   : > { %p4502_p7 = scmp.ge.s32.totalorder %s3590_s14, 1  ;;  %s129_s24 = sadd.s32 1, %s3558_s29 }
  0x53   : > { %p136_p9 = scmp.ne.s32.totalorder %s3558_s29, %s3554_s28  ;;  %p4504_p13 = scmp.eq.s32.totalorder %s3755_s17, 0 }
  0x54   : > { %p3837_p8 = pnand %p4502_p7, %p406_p2  ;;  %p4506_p5 = scmp.eq.s32.totalorder %s3590_s14, 0 }
  0x55   : > { %s3847_s26 = scalar_select %p4504_p13, %s3558_s29, %s129_s24  }
  0x56   : > { %s4503_s16 = scalar_select %p3837_p8, 1, 0 }
  0x57   : > { %4505 = sst [smem:[#allocation38_spill]] %s3847_s26  ;;  %p138_p10 = por %p136_p9, %p4506_p5 }
  0x58   : > { %p142_p0 = scmp.ne.s32.totalorder %s3554_s28, %s3550_s27  ;;  %s3854_s30 = sand.u32 1, %s3558_s29  }
  0x59   : > { %p4507_p3 = scmp.eq.s32.totalorder %s3720_s15, 0  ;;  %s2830_s22 = smul.u32 384, %s3854_s30 }
  0x5a   : > { %s2488_s19 = sshll.u32 %s3586_s13, 6  ;;  %p4510_p4 = scmp.lt.s32.totalorder %s3590_s14, 12 }
  0x5b   : > { %p3858_p12 = por %p142_p0, %p4507_p3  ;;  %s4512_s3 = sld [smem:[#allocation41_spill]] }
  0x5c   : > { %p3866_p1 = pnand %p4510_p4, %p138_p10  ;;  %s335_s11 = scalar_lea.vmem [#allocation8], %s2830_s22 }
  0x5d   : > { %s4508_s9 = scalar_select %p3858_p12, 1, 0 }
  0x5e   : > { %s4511_s21 = scalar_select %p3866_p1, 1, 0 }
  0x5f   : > { %4509 = sst [smem:[#allocation39_spill]] %s4508_s9  ;;  %s341_s1 = sshll.u32 %s335_s11, 4  ;;  %s3875_s1 = int_to_ptr.vmem [resolvable:$true] %s341_s1 }
  0x60   : > { %p3882_p7 = pneg %p3866_p1 }
  0x61   : > { %s3873_s27 = scalar_lea.hbm %s4512_s3, %s2488_s19  ;;  %s3257_s24 = scalar_lea.hbm %s4512_s3, 36864 }
  0x62   : > { %s3252_s29 = scalar_lea.hbm %s3873_s27, 6144  ;;  %p3258_p5 = scmp.lt.u32.totalorder %s3873_s27, %s4512_s3 }
  0x63   : > { %p3253_p2 = scmp.ne.s32.totalorder %s3873_s27, %s3252_s29  ;;  %p3259_p10 = scmp.lt.u32.totalorder %s3257_s24, %s3252_s29 }
  0x64   : > { %s4513_s14 = scalar_select %p3882_p7, 1, 0 }
  0x65   : > { %p3255_p9 = pnand %p3882_p7, %p3253_p2  ;;  %p3260_p0 = por %p3259_p10, %p3258_p5 }
  0x66   : > { %p3261_p3 = scmp.lt.u32.totalorder %s3252_s29, %s3873_s27 }
  0x67   : > { %p3256_p13 = pneg %p3255_p9 }
  0x68   : > { %p3262_p4 = por %p3261_p3, %p3260_p0 }
  0x6a   : > { %p3263_p12 = pnand %p3262_p4, %p3256_p13 }
  0x6c   : > { %3266 = shalt.err (!%p3263_p12)
}
  0x6d   : > { %s3267_s26 = scalar_lea.vmem %s3875_s1, 6144  ;;  %s3595_s19 = smov [#allocation8]  }
  0x6e   : > { %p3268_p2 = scmp.ne.s32.totalorder %s3875_s1, %s3267_s26  ;;  %s3272_s17 = sshll.u32 %s3595_s19, 4  ;;  %s3273_s17 = int_to_ptr.vmem [resolvable:$false] %s3272_s17 }
  0x6f   : > { %s3274_s22 = scalar_lea.vmem %s3273_s17, 12288  ;;  %p3275_p6 = scmp.lt.s32.totalorder %s3875_s1, %s3273_s17 }
  0x70   : > { %p3270_p9 = pnand %p3268_p2, %p3882_p7  ;;  %p3276_p11 = scmp.lt.s32.totalorder %s3274_s22, %s3267_s26 }
  0x72   : > { %p3271_p8 = pneg %p3270_p9  ;;  %p3277_p5 = por %p3276_p11, %p3275_p6 }
  0x74   : > { %p3278_p10 = pnand %p3277_p5, %p3271_p8 }
  0x76   : > { %3281 = shalt.err (!%p3278_p10)
}
  0x77   : > { %s3596_s29 = smov 384   ;;  %s3597_s24 = smov 64  }
  0x78   : > { %s3598_s11 = smov 4   ;;  %s4514_s19 = scalar_lea.sflag [#allocation9], %s3789_s7 }
  0x79   : > { %2865 = dma.hbm_to_vmem [thread:$0]  (!%p3866_p1), %s3873_s27, 6144, %s3875_s1, %s4514_s19, %s3596_s29, %s3597_s24, %s3598_s11  }
  0x7a   : > { %s2831_s3 = smul.u32 768, %s3854_s30  ;;  %s2662_s17 = sshll.u32 %s3586_s13, 7 }
  0x7b   : > { %s4515_s5 = sld [smem:[#allocation42_spill]]  ;;  %s369_s15 = scalar_lea.sflag [#allocation12], %s3789_s7 }
  0x7c   : > { %s372_s9 = scalar_lea.vmem [#allocation11], %s2831_s3 }
  0x7d   : > { %s379_s28 = sshll.u32 %s372_s9, 4  ;;  %s3914_s28 = int_to_ptr.vmem [resolvable:$true] %s379_s28 }
  0x81   : > { %s3912_s25 = scalar_lea.hbm %s4515_s5, %s2662_s17  ;;  %s3287_s29 = scalar_lea.hbm %s4515_s5, 73728 }
  0x82   : > { %s3282_s23 = scalar_lea.hbm %s3912_s25, 12288  ;;  %p3288_p12 = scmp.lt.u32.totalorder %s3912_s25, %s4515_s5 }
  0x83   : > { %p3283_p6 = scmp.ne.s32.totalorder %s3912_s25, %s3282_s23  ;;  %p3289_p13 = scmp.lt.u32.totalorder %s3287_s29, %s3282_s23 }
  0x84   : > { %p3291_p3 = scmp.lt.u32.totalorder %s3282_s23, %s3912_s25 }
  0x85   : > { %p3285_p11 = pnand %p3283_p6, %p3882_p7  ;;  %p3290_p0 = por %p3289_p13, %p3288_p12 }
  0x87   : > { %p3286_p8 = pneg %p3285_p11  ;;  %p3292_p4 = por %p3291_p3, %p3290_p0 }
  0x89   : > { %p3293_p2 = pnand %p3292_p4, %p3286_p8 }
  0x8b   : > { %3296 = shalt.err (!%p3293_p2)
}
  0x8c   : > { %s3297_s3 = scalar_lea.vmem %s3914_s28, 12288  ;;  %s3599_s9 = smov [#allocation11]  }
  0x8d   : > { %p3298_p9 = scmp.ne.s32.totalorder %s3914_s28, %s3297_s3  ;;  %s3302_s19 = sshll.u32 %s3599_s9, 4  ;;  %s3303_s19 = int_to_ptr.vmem [resolvable:$false] %s3302_s19 }
  0x8e   : > { %s3304_s17 = scalar_lea.vmem %s3303_s19, 24576  ;;  %p3305_p6 = scmp.lt.s32.totalorder %s3914_s28, %s3303_s19 }
  0x8f   : > { %p3300_p5 = pnand %p3298_p9, %p3882_p7  ;;  %p3306_p11 = scmp.lt.s32.totalorder %s3304_s17, %s3297_s3 }
  0x91   : > { %p3301_p10 = pneg %p3300_p5  ;;  %p3307_p12 = por %p3306_p11, %p3305_p6 }
  0x93   : > { %p3308_p13 = pnand %p3307_p12, %p3301_p10 }
  0x95   : > { %3311 = shalt.err (!%p3308_p13)
}
  0x96   : > { %s3600_s23 = smov 128   ;;  %s3601_s26 = smov 8  }
  0x97   : > { %s4516_s22 = smov 768   ;;  %s2826_s1 = smul.u32 96, %s3774_s18 }
  0x98   : > { %2871 = dma.hbm_to_vmem [thread:$0]  (!%p3866_p1), %s3912_s25, 12288, %s3914_s28, %s369_s15, %s4516_s22, %s3600_s23, %s3601_s26  }
  0x99   : > { %s2827_s27 = smul.u32 1536, %s3582_s12  ;;  %s2487_s29 = sshll.u32 %s3582_s12, 4 }
  0x9a   : > { %s3947_s3 = scalar_lea.hbm %s4429_s2, %s2487_s29  ;;  %s276_s5 = scalar_lea.vmem [#allocation2], %s2826_s1 }
  0x9b   : > { %s3952_s17 = scalar_lea.hbm %s4427_s0, %s2827_s27  ;;  %s283_s8 = sshll.u32 %s276_s5, 4  ;;  %s3954_s8 = int_to_ptr.vmem [resolvable:$true] %s283_s8 }
  0x9c   : > { %s317_s25 = scalar_lea.vmem [#allocation7], %s3774_s18  ;;  %s273_s23 = scalar_lea.sflag [#allocation3], %s3774_s18 }
  0x9d   : > { %s3957_s28 = sshll.u32 %s317_s25, 4  ;;  %s3312_s26 = scalar_lea.hbm %s3952_s17, 1536  ;;  %s325_s28 = int_to_ptr.vmem [resolvable:$true] %s3957_s28 }
  0x9e   : > { %p3313_p8 = scmp.ne.s32.totalorder %s3952_s17, %s3312_s26  ;;  %p4517_p0 = scmp.ne.s32.totalorder %s4500_s10, 0 }
  0x9f   : > { %s3317_s24 = scalar_lea.hbm %s4427_s0, 3072  ;;  %p3318_p2 = scmp.lt.u32.totalorder %s3952_s17, %s4427_s0 }
  0xa0   : > { %p3315_p3 = pnand %p3313_p8, %p4517_p0  ;;  %p3319_p9 = scmp.lt.u32.totalorder %s3317_s24, %s3312_s26 }
  0xa1   : > { %p3321_p10 = scmp.lt.u32.totalorder %s3312_s26, %s3952_s17 }
  0xa2   : > { %p3316_p4 = pneg %p3315_p3  ;;  %p3320_p5 = por %p3319_p9, %p3318_p2 }
  0xa4   : > { %p3322_p6 = por %p3321_p10, %p3320_p5 }
  0xa6   : > { %p3323_p11 = pnand %p3322_p6, %p3316_p4 }
  0xa8   : > { %3326 = shalt.err (!%p3323_p11)
}
  0xa9   : > { %s3327_s5 = scalar_lea.vmem %s3954_s8, 1536  ;;  %s3602_s1 = smov [#allocation2]  }
  0xaa   : > { %p3328_p12 = scmp.ne.s32.totalorder %s3954_s8, %s3327_s5  ;;  %s3332_s19 = sshll.u32 %s3602_s1, 4  ;;  %s3333_s19 = int_to_ptr.vmem [resolvable:$false] %s3332_s19 }
  0xab   : > { %s3334_s25 = scalar_lea.vmem %s3333_s19, 3072  ;;  %p3335_p3 = scmp.lt.s32.totalorder %s3954_s8, %s3333_s19 }
  0xac   : > { %p3330_p13 = pnand %p3328_p12, %p4517_p0  ;;  %p3336_p1 = scmp.lt.s32.totalorder %s3334_s25, %s3327_s5 }
  0xae   : > { %p3331_p8 = pneg %p3330_p13  ;;  %p3337_p2 = por %p3336_p1, %p3335_p3 }
  0xb0   : > { %p3338_p9 = pnand %p3337_p2, %p3331_p8 }
  0xb2   : > { %3341 = shalt.err (!%p3338_p9)
}
  0xb3   : > { %p4518_p4 = scmp.ne.s32.totalorder %s4498_s20, 0  ;;  %s4519_s26 = smov 48  }
  0xb4   : > { %s3342_s29 = scalar_lea.hbm %s3947_s3, 16  ;;  %s3347_s11 = scalar_lea.hbm %s4429_s2, 32 }
  0xb5   : > { %2856 = dma.hbm_to_vmem [thread:$0]  (!%p4518_p4), %s3952_s17, 1536, %s3954_s8, %s273_s23, %s4516_s22, %s4516_s22, %s4519_s26  }
  0xb6   : > { %p3343_p1 = scmp.ne.s32.totalorder %s3947_s3, %s3342_s29  ;;  %p3348_p6 = scmp.lt.u32.totalorder %s3947_s3, %s4429_s2 }
  0xb7   : > { %p3349_p11 = scmp.lt.u32.totalorder %s3347_s11, %s3342_s29  ;;  %p3351_p13 = scmp.lt.u32.totalorder %s3342_s29, %s3947_s3 }
  0xb8   : > { %p3345_p5 = pnand %p3343_p1, %p4517_p0 }
  0xb9   : > { %p3350_p12 = por %p3349_p11, %p3348_p6 }
  0xba   : > { %p3346_p10 = pneg %p3345_p5 }
  0xbb   : > { %p3352_p8 = por %p3351_p13, %p3350_p12 }
  0xbd   : > { %p3353_p3 = pnand %p3352_p8, %p3346_p10 }
  0xbf   : > { %3356 = shalt.err (!%p3353_p3)
}
  0xc0   : > { %s3357_s8 = scalar_lea.vmem %s325_s28, 16  ;;  %s3603_s22 = smov [#allocation7]  }
  0xc1   : > { %p3358_p2 = scmp.ne.s32.totalorder %s325_s28, %s3357_s8  ;;  %s3362_s17 = sshll.u32 %s3603_s22, 4  ;;  %s3363_s17 = int_to_ptr.vmem [resolvable:$false] %s3362_s17 }
  0xc2   : > { %s3364_s23 = scalar_lea.vmem %s3363_s17, 32  ;;  %p3365_p5 = scmp.lt.s32.totalorder %s325_s28, %s3363_s17 }
  0xc3   : > { %p3360_p9 = pnand %p3358_p2, %p4517_p0  ;;  %p3366_p7 = scmp.lt.s32.totalorder %s3364_s23, %s3357_s8 }
  0xc5   : > { %p3361_p1 = pneg %p3360_p9  ;;  %p3367_p4 = por %p3366_p7, %p3365_p5 }
  0xc7   : > { %p3368_p6 = pnand %p3367_p4, %p3361_p1 }
  0xc9   : > { %3371 = shalt.err (!%p3368_p6)
}
  0xca   : > { %p4520_p11 = scmp.ne.s32.totalorder %s4498_s20, 0  ;;  %s4521_s5 = scalar_lea.sflag [#allocation6], %s3789_s7 }
  0xcb   : > { %s2489_s10 = sshll.u32 %s3586_s13, 4  ;;  %s354_s1 = scalar_lea.vmem [#allocation10], %s3854_s30 }
  0xcc   : > { %2862 = dma.hbm_to_vmem [thread:$0]  (!%p4520_p11), %s3947_s3, 16, %s325_s28, %s4521_s5  }
  0xcd   : > { %s361_s19 = sshll.u32 %s354_s1, 4  ;;  %s359_s29 = scalar_lea.hbm %s4431_s4, %s2489_s10  ;;  %s362_s19 = int_to_ptr.vmem [resolvable:$true] %s361_s19 }
  0xce   : > { %s3372_s27 = scalar_lea.hbm %s359_s29, 16  ;;  %p4522_p0 = scmp.ne.s32.totalorder %s4513_s14, 0 }
  0xcf   : > { %p3373_p7 = scmp.ne.s32.totalorder %s359_s29, %s3372_s27  ;;  %s3377_s11 = scalar_lea.hbm %s4431_s4, 96 }
  0xd0   : > { %p3378_p12 = scmp.lt.u32.totalorder %s359_s29, %s4431_s4  ;;  %p3379_p13 = scmp.lt.u32.totalorder %s3377_s11, %s3372_s27 }
  0xd1   : > { %p3375_p4 = pnand %p3373_p7, %p4522_p0  ;;  %p3381_p3 = scmp.lt.u32.totalorder %s3372_s27, %s359_s29 }
  0xd2   : > { %p3380_p8 = por %p3379_p13, %p3378_p12 }
  0xd3   : > { %p3376_p10 = pneg %p3375_p4 }
  0xd4   : > { %p3382_p2 = por %p3381_p3, %p3380_p8 }
  0xd6   : > { %p3383_p9 = pnand %p3382_p2, %p3376_p10 }
  0xd8   : > { %3386 = shalt.err (!%p3383_p9)
}
  0xd9   : > { %s3387_s3 = scalar_lea.vmem %s362_s19, 16  ;;  %s3604_s28 = smov [#allocation10]  }
  0xda   : > { %p3388_p1 = scmp.ne.s32.totalorder %s362_s19, %s3387_s3  ;;  %s3392_s8 = sshll.u32 %s3604_s28, 4  ;;  %s3393_s8 = int_to_ptr.vmem [resolvable:$false] %s3392_s8 }
  0xdb   : > { %s3394_s22 = scalar_lea.vmem %s3393_s8, 32  ;;  %p3395_p11 = scmp.lt.s32.totalorder %s362_s19, %s3393_s8 }
  0xdc   : > { %p3390_p5 = pnand %p3388_p1, %p4522_p0  ;;  %p3396_p7 = scmp.lt.s32.totalorder %s3394_s22, %s3387_s3 }
  0xde   : > { %p3391_p6 = pneg %p3390_p5  ;;  %p3397_p4 = por %p3396_p7, %p3395_p11 }
  0xe0   : > { %p3398_p12 = pnand %p3397_p4, %p3391_p6 }
  0xe2   : > { %3401 = shalt.err (!%p3398_p12)
}
  0xe3   : > { %p4523_p13 = scmp.ne.s32.totalorder %s4511_s21, 0  ;;  %s4524_s17 = scalar_lea.sflag [#allocation9], %s3789_s7 }
  0xe4   : > { %s2492_s23 = sshll.u32 %s3854_s30, 1  ;;  %s2663_s5 = sshll.u32 %s3586_s13, 5 }
  0xe5   : > { %2868 = dma.hbm_to_vmem [thread:$0]  (!%p4523_p13), %s359_s29, 16, %s362_s19, %s4524_s17  }
  0xe6   : > { %s4030_s25 = scalar_lea.hbm %s4433_s6, %s2663_s5  ;;  %s393_s26 = scalar_lea.vmem [#allocation13], %s2492_s23 }
  0xe7   : > { %s401_s27 = sshll.u32 %s393_s26, 4  ;;  %s3402_s20 = scalar_lea.hbm %s4030_s25, 32  ;;  %s402_s27 = int_to_ptr.vmem [resolvable:$true] %s401_s27 }
  0xe8   : > { %p3403_p10 = scmp.ne.s32.totalorder %s4030_s25, %s3402_s20  ;;  %s3407_s29 = scalar_lea.hbm %s4433_s6, 192 }
  0xe9   : > { %p3408_p2 = scmp.lt.u32.totalorder %s4030_s25, %s4433_s6  ;;  %p3409_p9 = scmp.lt.u32.totalorder %s3407_s29, %s3402_s20 }
  0xea   : > { %p3405_p8 = pnand %p3403_p10, %p4522_p0  ;;  %p3411_p5 = scmp.lt.u32.totalorder %s3402_s20, %s4030_s25 }
  0xeb   : > { %p3410_p1 = por %p3409_p9, %p3408_p2 }
  0xec   : > { %p3406_p3 = pneg %p3405_p8 }
  0xed   : > { %p3412_p6 = por %p3411_p5, %p3410_p1 }
  0xef   : > { %p3413_p11 = pnand %p3412_p6, %p3406_p3 }
  0xf1   : > { %3416 = shalt.err (!%p3413_p11)
}
  0xf2   : > { %s3417_s18 = scalar_lea.vmem %s402_s27, 32  ;;  %s3605_s9 = smov [#allocation13]  }
  0xf3   : > { %p3418_p7 = scmp.ne.s32.totalorder %s402_s27, %s3417_s18  ;;  %s3422_s3 = sshll.u32 %s3605_s9, 4  ;;  %s3423_s3 = int_to_ptr.vmem [resolvable:$false] %s3422_s3 }
  0xf4   : > { %s3424_s28 = scalar_lea.vmem %s3423_s3, 64  ;;  %p3425_p10 = scmp.lt.s32.totalorder %s402_s27, %s3423_s3 }
  0xf5   : > { %p3420_p4 = pnand %p3418_p7, %p4522_p0  ;;  %p3426_p8 = scmp.lt.s32.totalorder %s3424_s28, %s3417_s18 }
  0xf7   : > { %p3421_p12 = pneg %p3420_p4  ;;  %p3427_p13 = por %p3426_p8, %p3425_p10 }
  0xf9   : > { %p3428_p2 = pnand %p3427_p13, %p3421_p12 }
  0xfb   : > { %3431 = shalt.err (!%p3428_p2)
}
  0xfc   : > { %p4525_p9 = scmp.ne.s32.totalorder %s4511_s21, 0  ;;  %p4526_p3 = scmp.ne.s32.totalorder %s4503_s16, 0 }
  0xfd   : > { %s4527_s14 = sld [smem:[#allocation25_spill]] (!%p4526_p3)  ;;  %s4528_s8 = sld [smem:[#allocation34_spill]] (!%p4526_p3) }
  0xfe   : > { %2874 = dma.hbm_to_vmem [thread:$0]  (!%p4525_p9), %s4030_s25, 32, %s402_s27, %s369_s15  }
  0xff   : > { %410 = sbr.rel (%p4526_p3) target bundleno = 2113 (0x841), region = 48 }
 0x103   : > { %s4054_s22 = sand.u32 (!%p4526_p3), 1, %s4527_s14   ;;  %p4529_p0 = scmp.ne.s32.totalorder (!%p4526_p3), %s4528_s8, 0 }
 0x104   : > { %s2832_s17 = smul.u32 (!%p4526_p3), 96, %s4054_s22  ;;  %s413_s23 = scalar_lea.sflag (!%p4526_p3), [#allocation3], %s4054_s22 }
 0x106   : > { %s4058_s5 = scalar_lea.vmem [#allocation2], %s2832_s17 }
 0x107   : > { %3517 = dma.done.wait (%p4529_p0), %s413_s23, 1536  }
 0x108   : > { %3519 = vsyncadd (%p4529_p0), %s413_s23, 4294965760  ;;  %s4530_s7 = sld [smem:[#allocation30_spill]]  ;;  %s2833_s21 = smul.u32 144, %s4054_s22 }
 0x10a   : > { %s4066_s10 = scalar_lea.vmem [#allocation5], %s2833_s21 }
 0x10e   : > { %s421_s15 = sand.u32 1, %s4530_s7  }
 0x10f   : > { %s422_s16 = scalar_lea.sflag [#allocation6], %s421_s15 }
 0x110   : > { %3521 = dma.done.wait (%p4529_p0), %s422_s16, 2320  }
 0x111   : > { %3523 = vsyncadd (%p4529_p0), %s422_s16, 4294964976  ;;  %s4531_s1 = sld [smem:[#allocation23_spill]]  ;;  %s4532_s25 = sld [smem:[#allocation39_spill]] }
 0x112   : > { %s433_s20 = scalar_lea.vmem [#allocation7], %s4054_s22  ;;  %s439_s19 = scalar_lea.sflag [#allocation9], %s421_s15 }
 0x117   : > { %s4073_s26 = sand.u32 1, %s4531_s1   ;;  %p4533_p13 = scmp.ne.s32.totalorder %s4532_s25, 0 }
 0x118   : > { %s2834_s27 = smul.u32 384, %s4073_s26 }
 0x11a   : > { %s4077_s30 = scalar_lea.vmem [#allocation8], %s2834_s27 }
 0x11b   : > { %3525 = dma.done.wait (%p4533_p13), %s439_s19, 6160  }
 0x11c   : > { %3527 = vsyncadd (%p4533_p13), %s439_s19, 4294961136  ;;  %s2835_s29 = smul.u32 768, %s4073_s26  ;;  %s450_s24 = scalar_lea.vmem [#allocation10], %s4073_s26 }
 0x11d   : > { %s456_s11 = scalar_lea.sflag [#allocation12], %s421_s15 }
 0x11e   : > { %s4085_s18 = scalar_lea.vmem [#allocation11], %s2835_s29 }
 0x11f   : > { %3529 = dma.done.wait (%p4533_p13), %s456_s11, 12320  }
 0x120   : > { %3531 = vsyncadd (%p4533_p13), %s456_s11, 4294954976  ;;  %v3014_v0 = vld [vmem:[%s4077_s30 + $0x40] sm:$0xff]   ;;  %v3018_v4 = vld [vmem:[%s4077_s30 + $0x48] sm:$0xff]   ;;  %vm1840_vm0 = vcmask 523264   ;;  %s2496_s9 = sshll.u32 %s4073_s26, 1  ;;  %s3606_s28 = smov 64  }
 0x121   : > { %v3015_v1 = vld [vmem:[%s4077_s30 + $0xc0] sm:$0xff]   ;;  %2664 = vmatprep.subr.bf16.mxu0 %v3014_v0  ;;  %v3019_v5 = vld [vmem:[%s4077_s30 + $0xc8] sm:$0xff]   ;;  %v3022_v8 = vld [vmem:[%s4077_s30 + $0x50] sm:$0xff]   ;;  %s468_s3 = scalar_lea.vmem [#allocation13], %s2496_s9  ;;  %vm1931_vm2 = vcmask 195584   ;;  %s4536_s14 = sld [smem:[#allocation21_spill]] }
 0x122   : > { %v3016_v2 = vld [vmem:[%s4077_s30] sm:$0xff]   ;;  %2686 = vmatprep.subr.bf16.mxu1 %v3015_v1  ;;  %v3020_v6 = vld [vmem:[%s4077_s30 + $0x8] sm:$0xff]   ;;  %v3023_v9 = vld [vmem:[%s4077_s30 + $0xd0] sm:$0xff]   ;;  %s4537_s8 = sld [smem:[#allocation27_spill]]  ;;  %s4538_s22 = sld [smem:[#allocation28_spill]] }
 0x123   : > { %v3017_v3 = vld [vmem:[%s4077_s30 + $0x80] sm:$0xff]   ;;  %2665 = vmatpush3.bf16.msra.mxu0 %v3016_v2  ;;  %v3021_v7 = vld [vmem:[%s4077_s30 + $0x88] sm:$0xff]   ;;  %v3024_v10 = vld [vmem:[%s4077_s30 + $0x10] sm:$0xff]   ;;  %s4539_s7 = sld [smem:[#allocation36_spill]]  ;;  %s4540_s26 = sld [smem:[#allocation43_spill]] }
 0x124   : > { %2687 = vmatpush3.bf16.msra.mxu1 %v3017_v3  ;;  %2666 = vmatprep.subr.bf16.mxu0 %v3018_v4  ;;  %v3025_v11 = vld [vmem:[%s4077_s30 + $0x90] sm:$0xff]   ;;  %v3026_v12 = vld [vmem:[%s4077_s30 + $0x58] sm:$0xff]   ;;  %v3030_v16 = vld [vmem:[%s4077_s30 + $0x60] sm:$0xff]   ;;  %s3607_s29 = smov [#allocation14]  }
 0x125   : > { %2688 = vmatprep.subr.bf16.mxu1 %v3019_v5  ;;  %v3027_v13 = vld [vmem:[%s4077_s30 + $0xd8] sm:$0xff]   ;;  %v3031_v17 = vld [vmem:[%s4077_s30 + $0xe0] sm:$0xff]   ;;  %v3034_v20 = vld [vmem:[%s4077_s30 + $0x68] sm:$0xff]  }
 0x126   : > { %v3028_v14 = vld [vmem:[%s4077_s30 + $0x18] sm:$0xff]   ;;  %v3032_v18 = vld [vmem:[%s4077_s30 + $0x20] sm:$0xff]   ;;  %v3035_v21 = vld [vmem:[%s4077_s30 + $0xe8] sm:$0xff]  }
 0x127   : > { %2667 = vmatpush3.bf16.msra.mxu0 %v3020_v6  ;;  %v3029_v15 = vld [vmem:[%s4077_s30 + $0x98] sm:$0xff]   ;;  %v3033_v19 = vld [vmem:[%s4077_s30 + $0xa0] sm:$0xff]   ;;  %v3036_v22 = vld [vmem:[%s4077_s30 + $0x28] sm:$0xff]   ;;  %s524_s17 = sand.u32 1, %s4536_s14  }
 0x128   : > { %2689 = vmatpush3.bf16.msra.mxu1 %v3021_v7  ;;  %2668 = vmatprep.subr.bf16.mxu0 %v3022_v8  ;;  %v3037_v23 = vld [vmem:[%s4077_s30 + $0xa8] sm:$0xff]   ;;  %v3038_v24 = vld [vmem:[%s4077_s30 + $0x70] sm:$0xff]   ;;  %v3042_v28 = vld [vmem:[%s4077_s30 + $0x78] sm:$0xff]   ;;  %s2836_s23 = smul.u32 12, %s4537_s8  ;;  %s4351_s19 = scalar_lea.sflag [#allocation4], %s524_s17 }
 0x129   : > { %2690 = vmatprep.subr.bf16.mxu1 %v3023_v9  ;;  %v3039_v25 = vld [vmem:[%s4077_s30 + $0xf0] sm:$0xff]   ;;  %v3043_v29 = vld [vmem:[%s4077_s30 + $0xf8] sm:$0xff]   ;;  %v531_v32 = vld [vmem:[%s4058_s5 + $0x8] sm:$0xff]  ;;  %p4542_p5 = scmp.ne.s32.totalorder %s4539_s7, 0 }
 0x12a   : > { %v3040_v26 = vld [vmem:[%s4077_s30 + $0x30] sm:$0xff]   ;;  %v3044_v30 = vld [vmem:[%s4077_s30 + $0x38] sm:$0xff]   ;;  %v539_v36 = vld [vmem:[%s4058_s5 + $0x48] sm:$0xff]  ;;  %s2269_s15 = sadd.s32 %s4538_s22, %s2836_s23 }
 0x12b   : > { %2669 = vmatpush3.bf16.msra.mxu0 %v3024_v10  ;;  %v3041_v27 = vld [vmem:[%s4077_s30 + $0xb0] sm:$0xff]   ;;  %v3045_v31 = vld [vmem:[%s4077_s30 + $0xb8] sm:$0xff]   ;;  %v3046_v44 = vld [vmem:[%s4077_s30 + $0x140] sm:$0xff]  }
 0x12c   : > { %2691 = vmatpush3.bf16.msra.mxu1 %v3025_v11  ;;  %2670 = vmatprep.subr.bf16.mxu0 %v3026_v12  ;;  %v537_v33 = vld [vmem:[%s4058_s5 + $0x38] sm:$0xff]  ;;  %v530_v37 = vld [vmem:[%s4058_s5] sm:$0xff]  ;;  %v536_v38 = vld [vmem:[%s4058_s5 + $0x30] sm:$0xff] }
 0x12d   : > { %2692 = vmatprep.subr.bf16.mxu1 %v3027_v13  ;;  %v533_v34 = vld [vmem:[%s4058_s5 + $0x18] sm:$0xff]  ;;  %v543_v35 = vpack.c.bf16 %v537_v33, %v531_v32  ;;  %v542_v40 = vpack.c.bf16 %v536_v38, %v530_v37  ;;  %v532_v41 = vld [vmem:[%s4058_s5 + $0x10] sm:$0xff]  ;;  %v538_v42 = vld [vmem:[%s4058_s5 + $0x40] sm:$0xff] }
 0x12e   : > { %v545_v39 = vpack.c.bf16 %v539_v36, %v533_v34  ;;  %v544_v43 = vpack.c.bf16 %v538_v42, %v532_v41  ;;  %v3047_v45 = vld [vmem:[%s4085_s18 + $0x100] ss:$8 sps:$4 sm:$0xff]   ;;  %v3049_v46 = vld [vmem:[%s4085_s18 + $0x104] ss:$8 sps:$4 sm:$0xff]   ;;  %v3052_v49 = vld [vmem:[%s4085_s18 + $0x110] ss:$8 sps:$4 sm:$0xff]  }
 0x12f   : > { %2671 = vmatpush3.bf16.msra.mxu0 %v3028_v14  ;;  %1002 = vmatprep.mubr.bf16.mxu0 %v543_v35  ;;  %v3050_v47 = vld [vmem:[%s4077_s30 + $0x100] sm:$0xff]   ;;  %v3051_v48 = vld [vmem:[%s4077_s30 + $0x148] sm:$0xff]   ;;  %v3056_v52 = vld [vmem:[%s4077_s30 + $0x150] sm:$0xff]  }
 0x130   : > { %2693 = vmatpush3.bf16.msra.mxu1 %v3029_v15  ;;  %2672 = vmatprep.subr.bf16.mxu0 %v3030_v16  ;;  %v3054_v50 = vld [vmem:[%s4085_s18 + $0x114] ss:$8 sps:$4 sm:$0xff]   ;;  %v3055_v51 = vld [vmem:[%s4077_s30 + $0x108] sm:$0xff]   ;;  %v3062_v57 = vld [vmem:[%s4085_s18 + $0x130] ss:$8 sps:$4 sm:$0xff]  }
 0x131   : > { %2694 = vmatprep.subr.bf16.mxu1 %v3031_v17  ;;  %1043 = vmatprep.mubr.bf16.mxu1 %v545_v39  ;;  %v3057_v53 = vld [vmem:[%s4085_s18 + $0x120] ss:$8 sps:$4 sm:$0xff]   ;;  %v3059_v54 = vld [vmem:[%s4085_s18 + $0x124] ss:$8 sps:$4 sm:$0xff]   ;;  %v3061_v56 = vld [vmem:[%s4077_s30 + $0x158] sm:$0xff]  }
 0x132   : > { %v3060_v55 = vld [vmem:[%s4077_s30 + $0x110] sm:$0xff]   ;;  %v3065_v59 = vld [vmem:[%s4077_s30 + $0x118] sm:$0xff]   ;;  %v3066_v60 = vld [vmem:[%s4077_s30 + $0x160] sm:$0xff]  }
 0x133   : > { %2673 = vmatpush3.bf16.msra.mxu0 %v3032_v18  ;;  %v3064_v58 = vld [vmem:[%s4085_s18 + $0x134] ss:$8 sps:$4 sm:$0xff]   ;;  %v3067_v61 = vld [vmem:[%s4085_s18 + $0x140] ss:$8 sps:$4 sm:$0xff]   ;;  %v3069_v62 = vld [vmem:[%s4085_s18 + $0x144] ss:$8 sps:$4 sm:$0xff]  }
 0x134   : > { %2695 = vmatpush3.bf16.msra.mxu1 %v3033_v19  ;;  %2674 = vmatprep.subr.bf16.mxu0 %v3034_v20  ;;  %v3070_v63 = vld [vmem:[%s4077_s30 + $0x120] sm:$0xff]   ;;  %v3071_v0 = vld [vmem:[%s4077_s30 + $0x168] sm:$0xff]   ;;  %v3072_v2 = vld [vmem:[%s4085_s18 + $0x150] ss:$8 sps:$4 sm:$0xff]  }
 0x135   : > { %2696 = vmatprep.subr.bf16.mxu1 %v3035_v21  ;;  %v3074_v1 = vld [vmem:[%s4085_s18 + $0x154] ss:$8 sps:$4 sm:$0xff]   ;;  %v3075_v3 = vld [vmem:[%s4077_s30 + $0x128] sm:$0xff]   ;;  %v3082_v12 = vld [vmem:[%s4085_s18 + $0x170] ss:$8 sps:$4 sm:$0xff]  }
 0x136   : > { %v3076_v4 = vld [vmem:[%s4077_s30 + $0x170] sm:$0xff]   ;;  %v3077_v6 = vld [vmem:[%s4085_s18 + $0x160] ss:$8 sps:$4 sm:$0xff]   ;;  %v3081_v8 = vld [vmem:[%s4077_s30 + $0x178] sm:$0xff]  }
 0x137   : > { %2675 = vmatpush3.bf16.msra.mxu0 %v3036_v22  ;;  %v3079_v5 = vld [vmem:[%s4085_s18 + $0x164] ss:$8 sps:$4 sm:$0xff]   ;;  %v3084_v9 = vld [vmem:[%s4085_s18 + $0x174] ss:$8 sps:$4 sm:$0xff]   ;;  %v3086_v19 = vld [vmem:[%s4085_s18 + $0x180] ss:$8 sps:$4 sm:$0xff]  }
 0x138   : > { %2697 = vmatpush3.bf16.msra.mxu1 %v3037_v23  ;;  %2676 = vmatprep.subr.bf16.mxu0 %v3038_v24  ;;  %v3080_v7 = vld [vmem:[%s4077_s30 + $0x130] sm:$0xff]   ;;  %v535_v10 = vld [vmem:[%s4058_s5 + $0x28] sm:$0xff]  ;;  %v3085_v13 = vld [vmem:[%s4077_s30 + $0x138] sm:$0xff]  }
 0x139   : > { %2698 = vmatprep.subr.bf16.mxu1 %v3039_v25  ;;  %v541_v11 = vld [vmem:[%s4058_s5 + $0x58] sm:$0xff]  ;;  %v534_v15 = vld [vmem:[%s4058_s5 + $0x20] sm:$0xff]  ;;  %v540_v16 = vld [vmem:[%s4058_s5 + $0x50] sm:$0xff]  ;;  %s2497_s5 = sshll.u32 %s524_s17, 4 }
 0x13a   : > { %v547_v14 = vpack.c.bf16 %v541_v11, %v535_v10  ;;  %v3088_v17 = vld [vmem:[%s4085_s18 + $0x184] ss:$8 sps:$4 sm:$0xff]   ;;  %v546_v18 = vpack.c.bf16 %v540_v16, %v534_v15  ;;  %v3091_v20 = vld [vmem:[%s4085_s18 + $0x194] ss:$8 sps:$4 sm:$0xff]   ;;  %v3089_v21 = vld [vmem:[%s4085_s18 + $0x190] ss:$8 sps:$4 sm:$0xff]  }
 0x13b   : > { %2677 = vmatpush3.bf16.msra.mxu0 %v3040_v26  ;;  %v3094_v22 = vld [vmem:[%s4085_s18 + $0x1a4] ss:$8 sps:$4 sm:$0xff]   ;;  %v3107_v23 = vld [vmem:[%s4085_s18] ss:$8 sps:$4 sm:$0xff]   ;;  %v3097_v26 = vld [vmem:[%s4085_s18 + $0x1b4] ss:$8 sps:$4 sm:$0xff]  }
 0x13c   : > { %2699 = vmatpush3.bf16.msra.mxu1 %v3041_v27  ;;  %2678 = vmatprep.subr.bf16.mxu0 %v3042_v28  ;;  %v3109_v24 = vld [vmem:[%s4085_s18 + $0x4] ss:$8 sps:$4 sm:$0xff]   ;;  %v3092_v25 = vld [vmem:[%s4085_s18 + $0x1a0] ss:$8 sps:$4 sm:$0xff]   ;;  %v3113_v27 = vld [vmem:[%s4085_s18 + $0x10] ss:$8 sps:$4 sm:$0xff]  }
 0x13d   : > { %2700 = vmatprep.subr.bf16.mxu1 %v3043_v29  ;;  %v3115_v28 = vld [vmem:[%s4085_s18 + $0x14] ss:$8 sps:$4 sm:$0xff]   ;;  %v3095_v32 = vld [vmem:[%s4085_s18 + $0x1b0] ss:$8 sps:$4 sm:$0xff]   ;;  %v3100_v33 = vld [vmem:[%s4085_s18 + $0x1c4] ss:$8 sps:$4 sm:$0xff]  }
 0x13e   : > { %v551_v29 = vld [vmem:[%s4066_s10 + $0x18] sm:$0xff]  ;;  %v562_v11 = vld [vmem:[%s4066_s10 + $0x70] sm:$0xff]  ;;  %v549_v15 = vld [vmem:[%s4066_s10 + $0x8] sm:$0xff]  ;;  %s526_s21 = scalar_lea.vmem [#allocation14], %s2497_s5 }
 0x13f   : > { %2679 = vmatpush3.bf16.msra.mxu0 %v3044_v30  ;;  %v557_v30 = vld [vmem:[%s4066_s10 + $0x48] sm:$0xff]  ;;  %vm4280_vm1 = vmpackc.low %vm1840_vm0, %vm1840_vm0  ;;  %s2272_s16 = sshll.u32 %s526_s21, 4  ;;  %s4342_s16 = int_to_ptr.vmem [resolvable:$true] %s2272_s16 }
 0x140   : > { %2701 = vmatpush3.bf16.msra.mxu1 %v3045_v31  ;;  %2708 = vmatprep.subr.bf16.mxu0 %v3046_v44  ;;  %v569_v31 = vpack.c.bf16 %v557_v30, %v551_v29  ;;  %v3121_v34 = vld [vmem:[%s4085_s18 + $0x24] ss:$8 sps:$4 sm:$0xff]   ;;  %v3119_v35 = vld [vmem:[%s4085_s18 + $0x20] ss:$8 sps:$4 sm:$0xff]   ;;  %v3127_v36 = vld [vmem:[%s4085_s18 + $0x34] ss:$8 sps:$4 sm:$0xff]  }
 0x141   : > { %1732 = vmatprep.subr.bf16.mxu1 %v3049_v46  ;;  %v3098_v37 = vld [vmem:[%s4085_s18 + $0x1c0] ss:$8 sps:$4 sm:$0xff]   ;;  %v3103_v38 = vld [vmem:[%s4085_s18 + $0x1d4] ss:$8 sps:$4 sm:$0xff]   ;;  %v3125_v39 = vld [vmem:[%s4085_s18 + $0x30] ss:$8 sps:$4 sm:$0xff]  }
 0x142   : > { %1003 = vmatmul.mubr.bf16.vlgmr.msra.gmra.mrb[0].mxu0 %v542_v40  ;;  %v3133_v40 = vld [vmem:[%s4085_s18 + $0x44] ss:$8 sps:$4 sm:$0xff]   ;;  %v3101_v41 = vld [vmem:[%s4085_s18 + $0x1d0] ss:$8 sps:$4 sm:$0xff]   ;;  %v3139_v44 = vld [vmem:[%s4085_s18 + $0x54] ss:$8 sps:$4 sm:$0xff]  }
 0x143   : > { %1044 = vmatmul.mubr.bf16.vlgmr.msra.gmra.mrb[0].mxu1 %v544_v43  ;;  %2709 = vmatpush3.bf16.msra.mxu0 %v3050_v47  ;;  %v3106_v42 = vld [vmem:[%s4085_s18 + $0x1e4] ss:$8 sps:$4 sm:$0xff]   ;;  %v3131_v43 = vld [vmem:[%s4085_s18 + $0x40] ss:$8 sps:$4 sm:$0xff]   ;;  %v3112_v46 = vld [vmem:[%s4085_s18 + $0x1f4] ss:$8 sps:$4 sm:$0xff]  }
 0x144   : > { %1733 = vmatpush1.bf16.msra.mxu1 %v3047_v45  ;;  %2710 = vmatprep.subr.bf16.mxu0 %v3051_v48  ;;  %v3104_v45 = vld [vmem:[%s4085_s18 + $0x1e0] ss:$8 sps:$4 sm:$0xff]   ;;  %v3137_v47 = vld [vmem:[%s4085_s18 + $0x50] ss:$8 sps:$4 sm:$0xff]   ;;  %v3145_v48 = vld [vmem:[%s4085_s18 + $0x64] ss:$8 sps:$4 sm:$0xff]  }
 0x145   : > { %1734 = vmatprep.subr.bf16.mxu1 %v3054_v50  ;;  %1084 = vmatprep.mubr.bf16.mxu0 %v547_v14  ;;  %v3118_v50 = vld [vmem:[%s4085_s18 + $0x204] ss:$8 sps:$4 sm:$0xff]   ;;  %v574_v14 = vpack.c.bf16 %v562_v11, %v562_v11  ;;  %v3158_v30 = vld [vmem:[%s4085_s18 + $0x270] ss:$8 sps:$4 sm:$0xff]   ;;  %s3432_s30 = scalar_lea.vmem %s4342_s16, 256 }
 0x146   : > { %1764 = vmatprep.mubr.bf16.mxu1 %v569_v31  ;;  %v3181_v16 = vld [vmem:[%s4085_s18 + $0xc4] ss:$8 sps:$4 sm:$0xff]   ;;  %p3433_p1 = scmp.ne.s32.totalorder %s4342_s16, %s3432_s30 }
 0x147   : > { %2711 = vmatpush3.bf16.msra.mxu0 %v3055_v51  ;;  %v550_v51 = vld [vmem:[%s4066_s10 + $0x10] sm:$0xff] }
 0x148   : > { %1735 = vmatpush1.bf16.msra.mxu1 %v3052_v49  ;;  %2712 = vmatprep.subr.bf16.mxu0 %v3056_v52  ;;  %v3110_v49 = vld [vmem:[%s4085_s18 + $0x1f0] ss:$8 sps:$4 sm:$0xff]   ;;  %v3193_v29 = vld [vmem:[%s4085_s18 + $0xe4] ss:$8 sps:$4 sm:$0xff]   ;;  %p3434_p6 = pnand %p3433_p1, %p4542_p5 }
 0x149   : > { %1736 = vmatprep.subr.bf16.mxu1 %v3059_v54  ;;  %v556_v52 = vld [vmem:[%s4066_s10 + $0x40] sm:$0xff] }
 0x14a   : > { %v3151_v54 = vld [vmem:[%s4085_s18 + $0x74] ss:$8 sps:$4 sm:$0xff]   ;;  %v3166_v31 = vld [vmem:[%s4085_s18 + $0x284] ss:$8 sps:$4 sm:$0xff]   ;;  %p3435_p11 = pneg %p3434_p6 }
 0x14b   : > { %2713 = vmatpush3.bf16.msra.mxu0 %v3060_v55  ;;  %v568_v55 = vpack.c.bf16 %v556_v52, %v550_v51  ;;  %v3196_v51 = vld [vmem:[%s4085_s18 + $0x2d4] ss:$8 sps:$4 sm:$0xff]   ;;  %v3194_v52 = vld [vmem:[%s4085_s18 + $0x2d0] ss:$8 sps:$4 sm:$0xff]  }
 0x14c   : > { %1737 = vmatpush1.bf16.msra.mxu1 %v3057_v53  ;;  %2714 = vmatprep.subr.bf16.mxu0 %v3061_v56  ;;  %v3143_v53 = vld [vmem:[%s4085_s18 + $0x60] ss:$8 sps:$4 sm:$0xff]  }
 0x14d   : > { %1738 = vmatprep.subr.bf16.mxu1 %v3064_v58  ;;  %v3116_v56 = vld [vmem:[%s4085_s18 + $0x200] ss:$8 sps:$4 sm:$0xff]   ;;  %v3149_v58 = vld [vmem:[%s4085_s18 + $0x70] ss:$8 sps:$4 sm:$0xff]  }
 0x14f   : > { %2715 = vmatpush3.bf16.msra.mxu0 %v3065_v59  ;;  %v3157_v59 = vld [vmem:[%s4085_s18 + $0x84] ss:$8 sps:$4 sm:$0xff]  }
 0x150   : > { %1739 = vmatpush1.bf16.msra.mxu1 %v3062_v57  ;;  %2716 = vmatprep.subr.bf16.mxu0 %v3066_v60  ;;  %v3124_v57 = vld [vmem:[%s4085_s18 + $0x214] ss:$8 sps:$4 sm:$0xff]   ;;  %v3122_v60 = vld [vmem:[%s4085_s18 + $0x210] ss:$8 sps:$4 sm:$0xff]  }
 0x151   : > { %1740 = vmatprep.subr.bf16.mxu1 %v3069_v62  ;;  %v3155_v62 = vld [vmem:[%s4085_s18 + $0x80] ss:$8 sps:$4 sm:$0xff]  }
 0x153   : > { %2717 = vmatpush3.bf16.msra.mxu0 %v3070_v63  ;;  %v3163_v63 = vld [vmem:[%s4085_s18 + $0x94] ss:$8 sps:$4 sm:$0xff]  }
 0x154   : > { %1741 = vmatpush1.bf16.msra.mxu1 %v3067_v61  ;;  %2718 = vmatprep.subr.bf16.mxu0 %v3071_v0  ;;  %v3130_v61 = vld [vmem:[%s4085_s18 + $0x224] ss:$8 sps:$4 sm:$0xff]   ;;  %v3128_v0 = vld [vmem:[%s4085_s18 + $0x220] ss:$8 sps:$4 sm:$0xff]  }
 0x155   : > { %1742 = vmatprep.subr.bf16.mxu1 %v3074_v1  ;;  %v3136_v1 = vld [vmem:[%s4085_s18 + $0x234] ss:$8 sps:$4 sm:$0xff]  }
 0x157   : > { %2719 = vmatpush3.bf16.msra.mxu0 %v3075_v3  ;;  %v3169_v3 = vld [vmem:[%s4085_s18 + $0xa4] ss:$8 sps:$4 sm:$0xff]  }
 0x158   : > { %1743 = vmatpush1.bf16.msra.mxu1 %v3072_v2  ;;  %2720 = vmatprep.subr.bf16.mxu0 %v3076_v4  ;;  %v3161_v2 = vld [vmem:[%s4085_s18 + $0x90] ss:$8 sps:$4 sm:$0xff]  }
 0x159   : > { %1744 = vmatprep.subr.bf16.mxu1 %v3079_v5  ;;  %v3134_v4 = vld [vmem:[%s4085_s18 + $0x230] ss:$8 sps:$4 sm:$0xff]   ;;  %v3142_v5 = vld [vmem:[%s4085_s18 + $0x244] ss:$8 sps:$4 sm:$0xff]  }
 0x15b   : > { %2721 = vmatpush3.bf16.msra.mxu0 %v3080_v7  ;;  %v3175_v7 = vld [vmem:[%s4085_s18 + $0xb4] ss:$8 sps:$4 sm:$0xff]  }
 0x15c   : > { %1745 = vmatpush1.bf16.msra.mxu1 %v3077_v6  ;;  %2722 = vmatprep.subr.bf16.mxu0 %v3081_v8  ;;  %v3167_v6 = vld [vmem:[%s4085_s18 + $0xa0] ss:$8 sps:$4 sm:$0xff]  }
 0x15d   : > { %1746 = vmatprep.subr.bf16.mxu1 %v3084_v9  ;;  %v3140_v8 = vld [vmem:[%s4085_s18 + $0x240] ss:$8 sps:$4 sm:$0xff]  }
 0x15e   : > { %v563_v9 = vld [vmem:[%s4066_s10 + $0x78] sm:$0xff] }
 0x15f   : > { %2723 = vmatpush3.bf16.msra.mxu0 %v3085_v13  ;;  %v575_v10 = vpack.c.bf16 %v563_v9, %v563_v9  ;;  %v3173_v13 = vld [vmem:[%s4085_s18 + $0xb0] ss:$8 sps:$4 sm:$0xff]  }
 0x160   : > { %1747 = vmatpush1.bf16.msra.mxu1 %v3082_v12  ;;  %1681 = vmatprep.subr.bf16.mxu0 %v3109_v24  ;;  %v3148_v12 = vld [vmem:[%s4085_s18 + $0x254] ss:$8 sps:$4 sm:$0xff]  }
 0x161   : > { %1748 = vmatprep.subr.bf16.mxu1 %v3088_v17  ;;  %v555_v17 = vld [vmem:[%s4066_s10 + $0x38] sm:$0xff] }
 0x162   : > { %1085 = vmatmul.mubr.bf16.vlgmr.msra.gmra.mrb[4].mxu0 %v546_v18  ;;  %v567_v18 = vpack.c.bf16 %v555_v17, %v549_v15 }
 0x163   : > { %1682 = vmatpush1.bf16.msra.mxu0 %v3107_v23  ;;  %v3179_v23 = vld [vmem:[%s4085_s18 + $0xc0] ss:$8 sps:$4 sm:$0xff]  }
 0x164   : > { %1749 = vmatpush1.bf16.msra.mxu1 %v3086_v19  ;;  %1683 = vmatprep.subr.bf16.mxu0 %v3115_v28  ;;  %v3146_v19 = vld [vmem:[%s4085_s18 + $0x250] ss:$8 sps:$4 sm:$0xff]  }
 0x165   : > { %1750 = vmatprep.subr.bf16.mxu1 %v3091_v20  ;;  %v553_v20 = vld [vmem:[%s4066_s10 + $0x28] sm:$0xff]  ;;  %1713 = vmatprep.mubr.bf16.mxu0 %v567_v18 }
 0x166   : > { %v3185_v28 = vld [vmem:[%s4085_s18 + $0xd0] ss:$8 sps:$4 sm:$0xff]  }
 0x167   : > { %1684 = vmatpush1.bf16.msra.mxu0 %v3113_v27  ;;  %v3160_v27 = vld [vmem:[%s4085_s18 + $0x274] ss:$8 sps:$4 sm:$0xff]  }
 0x168   : > { %1751 = vmatpush1.bf16.msra.mxu1 %v3089_v21  ;;  %1685 = vmatprep.subr.bf16.mxu0 %v3121_v34  ;;  %v559_v21 = vld [vmem:[%s4066_s10 + $0x58] sm:$0xff] }
 0x169   : > { %1752 = vmatprep.subr.bf16.mxu1 %v3094_v22  ;;  %v3154_v22 = vld [vmem:[%s4085_s18 + $0x264] ss:$8 sps:$4 sm:$0xff]   ;;  %v571_v24 = vpack.c.bf16 %v559_v21, %v553_v20  ;;  %v3164_v34 = vld [vmem:[%s4085_s18 + $0x280] ss:$8 sps:$4 sm:$0xff]  }
 0x16b   : > { %1686 = vmatpush1.bf16.msra.mxu0 %v3119_v35  ;;  %v3172_v35 = vld [vmem:[%s4085_s18 + $0x294] ss:$8 sps:$4 sm:$0xff]  }
 0x16c   : > { %1753 = vmatpush1.bf16.msra.mxu1 %v3092_v25  ;;  %1687 = vmatprep.subr.bf16.mxu0 %v3127_v36  ;;  %v3187_v25 = vld [vmem:[%s4085_s18 + $0xd4] ss:$8 sps:$4 sm:$0xff]   ;;  %v3197_v36 = vld [vmem:[%s4085_s18 + $0xf0] ss:$8 sps:$4 sm:$0xff]  }
 0x16d   : > { %1754 = vmatprep.subr.bf16.mxu1 %v3097_v26  ;;  %v3152_v26 = vld [vmem:[%s4085_s18 + $0x260] ss:$8 sps:$4 sm:$0xff]  }
 0x16f   : > { %1688 = vmatpush1.bf16.msra.mxu0 %v3125_v39  ;;  %v561_v39 = vld [vmem:[%s4066_s10 + $0x68] sm:$0xff] }
 0x170   : > { %1755 = vmatpush1.bf16.msra.mxu1 %v3095_v32  ;;  %1689 = vmatprep.subr.bf16.mxu0 %v3133_v40  ;;  %v3191_v32 = vld [vmem:[%s4085_s18 + $0xe0] ss:$8 sps:$4 sm:$0xff]   ;;  %v3170_v40 = vld [vmem:[%s4085_s18 + $0x290] ss:$8 sps:$4 sm:$0xff]  }
 0x171   : > { %1756 = vmatprep.subr.bf16.mxu1 %v3100_v33  ;;  %v3199_v33 = vld [vmem:[%s4085_s18 + $0xf4] ss:$8 sps:$4 sm:$0xff]  }
 0x173   : > { %1690 = vmatpush1.bf16.msra.mxu0 %v3131_v43  ;;  %v573_v43 = vpack.c.bf16 %v561_v39, %v561_v39 }
 0x174   : > { %1757 = vmatpush1.bf16.msra.mxu1 %v3098_v37  ;;  %1691 = vmatprep.subr.bf16.mxu0 %v3139_v44  ;;  %v548_v37 = vld [vmem:[%s4066_s10] sm:$0xff] }
 0x175   : > { %1758 = vmatprep.subr.bf16.mxu1 %v3103_v38  ;;  %v554_v38 = vld [vmem:[%s4066_s10 + $0x30] sm:$0xff] }
 0x176   : > { %v3176_v44 = vld [vmem:[%s4085_s18 + $0x2a0] ss:$8 sps:$4 sm:$0xff]  }
 0x177   : > { %1692 = vmatpush1.bf16.msra.mxu0 %v3137_v47  ;;  %v3182_v47 = vld [vmem:[%s4085_s18 + $0x2b0] ss:$8 sps:$4 sm:$0xff]  }
 0x178   : > { %1759 = vmatpush1.bf16.msra.mxu1 %v3101_v41  ;;  %1693 = vmatprep.subr.bf16.mxu0 %v3145_v48  ;;  %v566_v41 = vpack.c.bf16 %v554_v38, %v548_v37 }
 0x179   : > { %1760 = vmatprep.subr.bf16.mxu1 %v3106_v42  ;;  %v3178_v42 = vld [vmem:[%s4085_s18 + $0x2a4] ss:$8 sps:$4 sm:$0xff]  }
 0x17b   : > { %1694 = vmatpush1.bf16.msra.mxu0 %v3143_v53  ;;  %v3202_v53 = vld [vmem:[%s4085_s18 + $0x2e4] ss:$8 sps:$4 sm:$0xff]  }
 0x17c   : > { %1761 = vmatpush1.bf16.msra.mxu1 %v3104_v45  ;;  %1695 = vmatprep.subr.bf16.mxu0 %v3151_v54  ;;  %v3184_v45 = vld [vmem:[%s4085_s18 + $0x2b4] ss:$8 sps:$4 sm:$0xff]   ;;  %v3200_v54 = vld [vmem:[%s4085_s18 + $0x2e0] ss:$8 sps:$4 sm:$0xff]  }
 0x17d   : > { %1762 = vmatprep.subr.bf16.mxu1 %v3112_v46  ;;  %v560_v46 = vld [vmem:[%s4066_s10 + $0x60] sm:$0xff] }
 0x17e   : > { %v572_v48 = vpack.c.bf16 %v560_v46, %v560_v46 }
 0x17f   : > { %1696 = vmatpush1.bf16.msra.mxu0 %v3149_v58  ;;  %v558_v58 = vld [vmem:[%s4066_s10 + $0x50] sm:$0xff] }
 0x180   : > { %1763 = vmatpush1.bf16.msra.mxu1 %v3110_v49  ;;  %1697 = vmatprep.subr.bf16.mxu0 %v3157_v59  ;;  %v3190_v49 = vld [vmem:[%s4085_s18 + $0x2c4] ss:$8 sps:$4 sm:$0xff]  }
 0x181   : > { %1783 = vmatprep.subr.bf16.mxu1 %v3118_v50  ;;  %v3188_v50 = vld [vmem:[%s4085_s18 + $0x2c0] ss:$8 sps:$4 sm:$0xff]  }
 0x182   : > { %v565_v59 = vld [vmem:[%s4066_s10 + $0x88] sm:$0xff] }
 0x183   : > { %1765 = vmatmul.mubr.bf16.vlgmr.msra.gmra.mrb[4].mxu1 %v568_v55  ;;  %1698 = vmatpush1.bf16.msra.mxu0 %v3155_v62  ;;  %v3205_v55 = vld [vmem:[%s4085_s18 + $0x2f4] ss:$8 sps:$4 sm:$0xff]  }
 0x184   : > { %1784 = vmatpush1.bf16.msra.mxu1 %v3116_v56  ;;  %1699 = vmatprep.subr.bf16.mxu0 %v3163_v63  ;;  %v3203_v56 = vld [vmem:[%s4085_s18 + $0x2f0] ss:$8 sps:$4 sm:$0xff]  }
 0x185   : > { %1785 = vmatprep.subr.bf16.mxu1 %v3124_v57  ;;  %1774 = vmatprep.mubr.bf16.mxu1 %v575_v10  ;;  %v552_v57 = vld [vmem:[%s4066_s10 + $0x20] sm:$0xff] }
 0x186   : > { %v564_v62 = vld [vmem:[%s4066_s10 + $0x80] sm:$0xff]  ;;  %s2659_s10 = sshll.u32 %s2269_s15, 7 }
 0x187   : > { %1700 = vmatpush1.bf16.msra.mxu0 %v3161_v2  ;;  %v576_v63 = vpack.c.bf16 %v564_v62, %v564_v62  ;;  %v2498_v2 = vld [vmem:[%s450_s24] ss:$0 sm:$0xff]  ;;  %s4347_s27 = scalar_lea.hbm %s4540_s26, %s2659_s10  ;;  %s3436_s24 = sshll.u32 %s3607_s29, 4  ;;  %s3437_s24 = int_to_ptr.vmem [resolvable:$false] %s3436_s24 }
 0x188   : > { %1786 = vmatpush1.bf16.msra.mxu1 %v3122_v60  ;;  %1701 = vmatprep.subr.bf16.mxu0 %v3169_v3  ;;  %v570_v60 = vpack.c.bf16 %v558_v58, %v552_v57  ;;  %s3438_s11 = scalar_lea.vmem %s3437_s24, 512  ;;  %p3439_p7 = scmp.lt.s32.totalorder %s4342_s16, %s3437_s24 }
 0x189   : > { %1787 = vmatprep.subr.bf16.mxu1 %v3130_v61  ;;  %v577_v61 = vpack.c.bf16 %v565_v59, %v565_v59  ;;  %p3440_p4 = scmp.lt.s32.totalorder %s3438_s11, %s3432_s30 }
 0x18b   : > { %1702 = vmatpush1.bf16.msra.mxu0 %v3167_v6  ;;  %1775 = vmatmul.mubr.bf16.gmra.mrb[8].mxu1 %v574_v14  ;;  %p3441_p12 = por %p3440_p4, %p3439_p7 }
 0x18c   : > { %1788 = vmatpush1.bf16.msra.mxu1 %v3128_v0  ;;  %1703 = vmatprep.subr.bf16.mxu0 %v3175_v7 }
 0x18d   : > { %1789 = vmatprep.subr.bf16.mxu1 %v3136_v1  ;;  %1815 = vmatprep.mubr.bf16.mxu1 %v571_v24  ;;  %p3442_p10 = pnand %p3441_p12, %p3435_p11 }
 0x18f   : > { %1704 = vmatpush1.bf16.msra.mxu0 %v3173_v13 }
 0x190   : > { %1790 = vmatpush1.bf16.msra.mxu1 %v3134_v4  ;;  %1705 = vmatprep.subr.bf16.mxu0 %v3181_v16 }
 0x191   : > { %1791 = vmatprep.subr.bf16.mxu1 %v3142_v5 }
 0x193   : > { %1706 = vmatpush1.bf16.msra.mxu0 %v3179_v23 }
 0x194   : > { %1792 = vmatpush1.bf16.msra.mxu1 %v3140_v8  ;;  %1707 = vmatprep.subr.bf16.mxu0 %v3187_v25 }
 0x195   : > { %1793 = vmatprep.subr.bf16.mxu1 %v3148_v12 }
 0x197   : > { %1708 = vmatpush1.bf16.msra.mxu0 %v3185_v28 }
 0x198   : > { %1794 = vmatpush1.bf16.msra.mxu1 %v3146_v19  ;;  %1709 = vmatprep.subr.bf16.mxu0 %v3193_v29  ;;  %v1191_v29 = vlaneseq }
 0x199   : > { %1795 = vmatprep.subr.bf16.mxu1 %v3154_v22 }
 0x19b   : > { %1710 = vmatpush1.bf16.msra.mxu0 %v3191_v32 }
 0x19c   : > { %1796 = vmatpush1.bf16.msra.mxu1 %v3152_v26  ;;  %1711 = vmatprep.subr.bf16.mxu0 %v3199_v33 }
 0x19d   : > { %1797 = vmatprep.subr.bf16.mxu1 %v3160_v27 }
 0x19f   : > { %1712 = vmatpush1.bf16.msra.mxu0 %v3197_v36  ;;  %v1189_v36 = vld [vmem:[%s468_s3] sm:$0x3] }
 0x1a0   : > { %1798 = vmatpush1.bf16.msra.mxu1 %v3158_v30 }
 0x1a1   : > { %1799 = vmatprep.subr.bf16.mxu1 %v3166_v31 }
 0x1a2   : > { %1714 = vmatmul.mubr.bf16.vlgmr.msra.gmra.mrb[8].mxu0 %v566_v41 }
 0x1a3   : > { %1723 = vmatprep.mubr.bf16.mxu0 %v573_v43 }
 0x1a4   : > { %1800 = vmatpush1.bf16.msra.mxu1 %v3164_v34  ;;  %v1192_v34 = vshrl.u32 %v1191_v29, 7 }
 0x1a5   : > { %1801 = vmatprep.subr.bf16.mxu1 %v3172_v35 }
 0x1a6   : > { %v1193_v35 = vsub.s32 0, %v1192_v34  ;;  %v1197_v37 = vsub.s32 1, %v1192_v34 }
 0x1a8   : > { %1802 = vmatpush1.bf16.msra.mxu1 %v3170_v40  ;;  %v1194_v38 = vrot.slane %v1189_v36, %v1193_v35  ;;  %v1198_v39 = vrot.slane %v1189_v36, %v1197_v37 }
 0x1a9   : > { %1803 = vmatprep.subr.bf16.mxu1 %v3178_v42 }
 0x1aa   : > { %1724 = vmatmul.mubr.bf16.gmra.mrb[12].mxu0 %v572_v48 }
 0x1ac   : > { %1804 = vmatpush1.bf16.msra.mxu1 %v3176_v44 }
 0x1ad   : > { %1805 = vmatprep.subr.bf16.mxu1 %v3184_v45 }
 0x1b0   : > { %1806 = vmatpush1.bf16.msra.mxu1 %v3182_v47 }
 0x1b1   : > { %1807 = vmatprep.subr.bf16.mxu1 %v3190_v49 }
 0x1b4   : > { %1808 = vmatpush1.bf16.msra.mxu1 %v3188_v50 }
 0x1b5   : > { %1809 = vmatprep.subr.bf16.mxu1 %v3196_v51 }
 0x1b8   : > { %1810 = vmatpush1.bf16.msra.mxu1 %v3194_v52 }
 0x1b9   : > { %1811 = vmatprep.subr.bf16.mxu1 %v3202_v53 }
 0x1bc   : > { %1812 = vmatpush1.bf16.msra.mxu1 %v3200_v54 }
 0x1bd   : > { %1813 = vmatprep.subr.bf16.mxu1 %v3205_v55 }
 0x1c0   : > { %1814 = vmatpush1.bf16.msra.mxu1 %v3203_v56 }
 0x1c3   : > { %1816 = vmatmul.mubr.bf16.vlgmr.msra.gmra.mrb[4].mxu1 %v570_v60 }
 0x1c4   : > { %1825 = vmatprep.mubr.bf16.mxu1 %v577_v61 }
 0x1cb   : > { %1826 = vmatmul.mubr.bf16.gmra.mrb[8].mxu1 %v576_v63 }
 0x215   : > { %v2680_v0 = vpop.f32.mrb[0].mxu0 }
 0x216   : > { %v2702_v1 = vpop.f32.mrb[0].mxu1  ;;  %v2681_v3 = vpop.f32.mrb[1].mxu0 }
 0x217   : > { %v2682_v4 = vadd.f32 %v2681_v3, %v2680_v0  ;;  %v2703_v5 = vpop.f32.mrb[1].mxu1  ;;  %v2683_v6 = vpop.f32.mrb[2].mxu0 }
 0x218   : > { %v2704_v7 = vadd.f32 %v2703_v5, %v2702_v1  ;;  %v2705_v8 = vpop.f32.mrb[2].mxu1  ;;  %v2684_v9 = vpop.f32.mrb[3].mxu0  ;;  %v2643_v1 = vld [vmem:[%s433_s20] ss:$0 sm:$0xff]  ;;  %s4541_s20 = smov %s4540_s26 }
 0x219   : > { %v1005_v10 = vadd.f32 %v2682_v4, %v2498_v2  ;;  %v2685_v11 = vadd.f32 %v2684_v9, %v2683_v6  ;;  %v2706_v12 = vpop.f32.mrb[3].mxu1 }
 0x21a   : > { %v2707_v13 = vadd.f32 %v2706_v12, %v2705_v8 }
 0x21b   : > { %v1046_v14 = vadd.f32 %v2704_v7, %v1005_v10  ;;  %v1008_v15 = vadd.f32 %v2685_v11, %v2498_v2 }
 0x21d   : > { %v1049_v16 = vadd.f32 %v2707_v13, %v1008_v15 }
 0x235   : > { %v2724_v17 = vpop.f32.mrb[4].mxu0 }
 0x236   : > { %v2725_v18 = vpop.f32.mrb[5].mxu0 }
 0x237   : > { %v2726_v19 = vadd.f32 %v2725_v18, %v2724_v17  ;;  %v2727_v20 = vpop.f32.mrb[6].mxu0 }
 0x238   : > { %v2728_v21 = vpop.f32.mrb[7].mxu0 }
 0x239   : > { %v4267_v22 = vadd.f32 %v2726_v19, %v1046_v14  ;;  %v2729_v23 = vadd.f32 %v2728_v21, %v2727_v20 }
 0x23b   : > { %v4269_v24 = vadd.f32 %v2729_v23, %v1049_v16  ;;  %2756 = vmatprep.mubr.msk.f32.mxu0 %vm1840_vm0, %v4267_v22 }
 0x275   : > { %v1715_v25 = vpop.f32.mrb[8].mxu0 }
 0x276   : > { %v1717_v26 = vpop.f32.mrb[9].mxu0  ;;  %v1716_v40 = vadd.f32 %v1715_v25, %v1194_v38 }
 0x277   : > { %v1719_v27 = vpop.f32.mrb[10].mxu0  ;;  %v1718_v41 = vadd.f32 %v1717_v26, %v1198_v39 }
 0x278   : > { %v1721_v28 = vpop.f32.mrb[11].mxu0  ;;  %v1720_v43 = vadd.f32 %v1719_v27, %v1194_v38 }
 0x279   : > { %v1722_v46 = vadd.f32 %v1721_v28, %v1198_v39 }
 0x27d   : > { %v1725_v30 = vpop.f32.mrb[12].mxu0 }
 0x27e   : > { %v1727_v31 = vpop.f32.mrb[13].mxu0  ;;  %v1726_v55 = vadd.f32 %v1725_v30, %v1194_v38 }
 0x27f   : > { %v1729_v32 = vpop.f32.mrb[14].mxu0  ;;  %v1728_v58 = vadd.f32 %v1727_v31, %v1198_v39 }
 0x280   : > { %v1730_v33 = vpop.f32.mrb[15].mxu0 }
 0x296   : > { %v1817_v42 = vpop.f32.mrb[4].mxu1 }
 0x297   : > { %v2807_v44 = vadd.f32 %v1817_v42, %v1716_v40  ;;  %v1819_v45 = vpop.f32.mrb[5].mxu1 }
 0x298   : > { %v4274_v47 = vadd.f32 %v1819_v45, %v1718_v41  ;;  %v1821_v48 = vpop.f32.mrb[6].mxu1 }
 0x299   : > { %v2811_v49 = vadd.f32 %v1821_v48, %v1720_v43  ;;  %v1823_v50 = vpop.f32.mrb[7].mxu1 }
 0x29a   : > { %v4276_v51 = vadd.f32 %v1823_v50, %v1722_v46 }
 0x29b   : > { %v3004_v53 = vpack.i.bf16 %v2811_v49, %v2807_v44  ;;  %v2786_v54 = vpack.c.bf16 %v2811_v49, %v2807_v44 }
 0x29c   : > { %v3009_v56 = vpack.i.bf16 %v4276_v51, %v4274_v47  ;;  %v2792_v57 = vpack.c.bf16 %v4276_v51, %v4274_v47 }
 0x29d   : > { %2788 = vmatprep.subr.msk.bf16.mxu0 %vm4280_vm1, %v2786_v54 }
 0x29e   : > { %v1827_v59 = vpop.f32.mrb[8].mxu1  ;;  %2791 = vmatpush3.bf16.xpose.msk.msra.mxu0 %vm4280_vm1, %v2786_v54 }
 0x29f   : > { %v2815_v60 = vadd.f32 %v1827_v59, %v1726_v55  ;;  %v1829_v61 = vpop.f32.mrb[9].mxu1 }
 0x2a0   : > { %v4292_v62 = vadd.f32 %v1829_v61, %v1728_v58  ;;  %v1831_v63 = vpop.f32.mrb[10].mxu1 }
 0x2a1   : > { %v1832_v0 = vpop.f32.mrb[11].mxu1  ;;  %2043 = vrot.lane.b32.xlu1 %v2815_v60, %s3606_s28  ;;  %2754 = vmatprep.subr.msk.mxu0 %vm1840_vm0, %v2815_v60 }
 0x2a6   : > { %2755 = vmatpush3.xpose.msk.msra.mxu0 %vm1840_vm0, %v2815_v60 }
 0x2a7   : > { %2793 = vmatprep.subr.bf16.mxu0 %v2792_v57 }
 0x2a9   : > { %2757 = vmatmul.mubr.msk.f32.vlgmr.msra.gmra.mrb[16].mxu0 %vm1840_vm0, %v4269_v24 }
 0x2aa   : > { %2795 = vmatpush3.bf16.msra.mxu0 %v2792_v57 }
 0x2ab   : > { %2763 = vmatprep.subr.mxu0 %v4292_v62 }
 0x2ae   : > { %2764 = vmatpush3.msra.mxu0 %v4292_v62 }
 0x313   : > { %v2044_v23 = vpop.permute.xlu1 %2043 }
 0x37c   : > { %v2758_v2 = vpop.f32.mrb[16].mxu0 }
 0x37d   : > { %v1922_v3 = vpop.f32.mrb[17].mxu0  ;;  %v1928_v5 = vadd.f32 %v2758_v2, %v2643_v1 }
 0x37e   : > { %v1923_v4 = vadd.f32 %v2643_v1, %v1922_v3 }
 0x37f   : > { %v1935_v7 = vsel %vm1931_vm2, %v1928_v5, -inf }
 0x380   : > { %v1932_v6 = vsel %vm1931_vm2, %v1923_v4, -inf }
 0x381   : > { %1933 = vmax.xlane.f32.xlu0 %v1932_v6 }
 0x385   : > { %1936 = vmax.xlane.f32.xlu0 %v1935_v7 }
 0x39b   : > { %3005 = vrot.lane.b32.xlu0 %v3004_v53, %s3606_s28 }
 0x40e   : > { %v1934_v8 = vpop.xlane.xlu0 %1933 }
 0x40f   : > { %v1938_v9 = vsub.f32 %v1923_v4, %v1934_v8 }
 0x411   : > { %v1940_v12 = vmul.f32 1.442695, %v1938_v9 }
 0x412   : > { %v1937_v10 = vpop.xlane.xlu0 %1936 }
 0x413   : > { %v1939_v11 = vsub.f32 %v1928_v5, %v1937_v10 }
 0x415   : > { %v1942_v13 = vmul.f32 1.442695, %v1939_v11 }
 0x416   : > { %v3006_v14 = vpop.permute.xlu0 %3005 }
 0x417   : > { %3206 = vpow2.f32 %v1942_v13  ;;  %v3008_v15 = vunpack.i.h.bf16 %v3006_v14  ;;  %v3007_v16 = vunpack.i.l.bf16 %v3006_v14 }
 0x418   : > { %3208 = vpow2.f32 %v1940_v12 }
 0x419   : > { %v2796_v17 = vpack.c.bf16 %v3008_v15, %v3007_v16 }
 0x41b   : > { %2798 = vmatprep.subr.msk.bf16.mxu0 %vm4280_vm1, %v2796_v17 }
 0x421   : > { %v3207_v18 = vpop.eup %3206 }
 0x422   : > { %v1947_v19 = vsel %vm1931_vm2, %v3207_v18, 0.0  ;;  %v3209_v20 = vpop.eup %3208 }
 0x423   : > { %1948 = vadd.xlane.f32.xlu1 %v1947_v19  ;;  %v1944_v21 = vsel %vm1931_vm2, %v3209_v20, 0.0 }
 0x427   : > { %1945 = vadd.xlane.f32.xlu1 %v1944_v21 }
 0x438   : > { %2035 = vrot.lane.b32.xlu1 %v4267_v22, %s3606_s28 }
 0x43c   : > { %2037 = vrot.lane.b32.xlu1 %v4269_v24, %s3606_s28 }
 0x4b0   : > { %v1949_v25 = vpop.xlane.xlu1 %1948 }
 0x4b1   : > { %3210 = vrcp.f32 %v1949_v25 }
 0x4b4   : > { %v1946_v26 = vpop.xlane.xlu1 %1945 }
 0x4b5   : > { %3212 = vrcp.f32 %v1946_v26 }
 0x4b8   : > { %v2036_v31 = vpop.permute.xlu1 %2035 }
 0x4bb   : > { %v3211_v27 = vpop.eup %3210 }
 0x4bc   : > { %v1953_v30 = vmul.f32 %v3211_v27, %v3207_v18  ;;  %v2038_v22 = vpop.permute.xlu1 %2037 }
 0x4bf   : > { %v3213_v28 = vpop.eup %3212 }
 0x4c0   : > { %v1951_v29 = vmul.f32 %v3213_v28, %v3209_v20 }
 0x4c2   : > { %2765 = vmatprep.mubr.msk.f32.mxu0 %vm1931_vm2, %v1951_v29 }
 0x4c3   : > { %2766 = vmatmul.mubr.msk.f32.vlgmr.msra.gmra.mrb[18].mxu0 %vm1931_vm2, %v1953_v30 }
 0x4c4   : > { %2801 = vmatpush3.bf16.xpose.msk.msra.mxu0 %vm4280_vm1, %v2796_v17  ;;  %2774 = vmatprep.mubr.msk.f32.mxu0 %vm1840_vm0, %v2036_v31 }
 0x4c5   : > { %2772 = vmatprep.subr.msk.mxu0 %vm1840_vm0, %v2044_v23 }
 0x4cc   : > { %2773 = vmatpush3.xpose.msk.msra.mxu0 %vm1840_vm0, %v2044_v23 }
 0x4cf   : > { %2775 = vmatmul.mubr.msk.f32.vlgmr.msra.gmra.mrb[20].mxu0 %vm1840_vm0, %v2038_v22 }
 0x596   : > { %v4322_v24 = vpop.f32.mrb[18].mxu0 }
 0x597   : > { %v2026_v32 = vpop.f32.mrb[19].mxu0 }
 0x5a2   : > { %v2776_v33 = vpop.f32.mrb[20].mxu0 }
 0x5a3   : > { %v2127_v34 = vadd.f32 %v2776_v33, %v2643_v1  ;;  %v2121_v35 = vpop.f32.mrb[21].mxu0 }
 0x5a4   : > { %v2122_v36 = vadd.f32 %v2643_v1, %v2121_v35 }
 0x5a5   : > { %v2133_v37 = vsel %vm1931_vm2, %v2127_v34, -inf }
 0x5a6   : > { %2134 = vmax.xlane.f32.xlu1 %v2133_v37  ;;  %v2130_v38 = vsel %vm1931_vm2, %v2122_v36, -inf }
 0x5a7   : > { %2131 = vmax.xlane.f32.xlu0 %v2130_v38 }
 0x5b7   : > { %2159 = vrot.lane.b32.xlu1 %v4292_v62, %s3606_s28 }
 0x633   : > { %v2135_v39 = vpop.xlane.xlu1 %2134 }
 0x634   : > { %v2137_v40 = vsub.f32 %v2127_v34, %v2135_v39  ;;  %v2132_v41 = vpop.xlane.xlu0 %2131 }
 0x635   : > { %v2136_v42 = vsub.f32 %v2122_v36, %v2132_v41 }
 0x636   : > { %v2140_v43 = vmul.f32 1.442695, %v2137_v40 }
 0x637   : > { %v2138_v44 = vmul.f32 1.442695, %v2136_v42  ;;  %v2160_v59 = vpop.permute.xlu1 %2159 }
 0x638   : > { %3214 = vpow2.f32 %v2140_v43 }
 0x639   : > { %3216 = vpow2.f32 %v2138_v44 }
 0x642   : > { %v3215_v45 = vpop.eup %3214 }
 0x643   : > { %v2145_v46 = vsel %vm1931_vm2, %v3215_v45, 0.0  ;;  %v3217_v48 = vpop.eup %3216 }
 0x644   : > { %2146 = vadd.xlane.f32.xlu0 %v2145_v46  ;;  %v2142_v49 = vsel %vm1931_vm2, %v3217_v48, 0.0 }
 0x648   : > { %2143 = vadd.xlane.f32.xlu0 %v2142_v49 }
 0x65e   : > { %3010 = vrot.lane.b32.xlu0 %v3009_v56, %s3606_s28 }
 0x6d1   : > { %v2147_v50 = vpop.xlane.xlu0 %2146 }
 0x6d2   : > { %3218 = vrcp.f32 %v2147_v50 }
 0x6d5   : > { %v2144_v52 = vpop.xlane.xlu0 %2143 }
 0x6d6   : > { %3220 = vrcp.f32 %v2144_v52 }
 0x6d9   : > { %v3011_v53 = vpop.permute.xlu0 %3010 }
 0x6da   : > { %v3013_v54 = vunpack.i.h.bf16 %v3011_v53  ;;  %v3012_v55 = vunpack.i.l.bf16 %v3011_v53 }
 0x6dc   : > { %v2802_v57 = vpack.c.bf16 %v3013_v54, %v3012_v55  ;;  %v3219_v58 = vpop.eup %3218 }
 0x6dd   : > { %v2151_v47 = vmul.f32 %v3219_v58, %v3215_v45 }
 0x6de   : > { %2803 = vmatprep.subr.bf16.mxu0 %v2802_v57 }
 0x6df   : > { %2805 = vmatpush3.bf16.msra.mxu0 %v2802_v57 }
 0x6e0   : > { %v3221_v60 = vpop.eup %3220  ;;  %2781 = vmatprep.subr.mxu0 %v2160_v59 }
 0x6e1   : > { %v2149_v61 = vmul.f32 %v3221_v60, %v3217_v48 }
 0x6e3   : > { %2782 = vmatpush3.msra.mxu0 %v2160_v59  ;;  %2783 = vmatprep.mubr.msk.f32.mxu0 %vm1931_vm2, %v2149_v61 }
 0x6e4   : > { %2784 = vmatmul.mubr.msk.f32.vlgmr.msra.gmra.mrb[22].mxu0 %vm1931_vm2, %v2151_v47 }
 0x7b7   : > { %v2785_v51 = vpop.f32.mrb[22].mxu0 }
 0x7b8   : > { %v2236_v56 = vpop.f32.mrb[23].mxu0 }
 0x7b9   : > { %2247 = vrot.lane.b32.xlu1 %v2236_v56, %s3606_s28 }
 0x7bd   : > { %2249 = vrot.lane.b32.xlu1 %v2785_v51, %s3606_s28 }
 0x82b   : > { %v2248_v62 = vpop.permute.xlu1 %2247 }
 0x82c   : > { %v2253_v63 = vsel %vm1840_vm0, %v2026_v32, %v2248_v62 }
 0x82d   : > { %2255 = vst [vmem:[%s526_s21] sm:$0xff] %v2253_v63 }
 0x82f   : > { %v2250_v0 = vpop.permute.xlu1 %2249 }
 0x830   : > { %v2254_v1 = vsel %vm1840_vm0, %v4322_v24, %v2250_v0 }
 0x831   : > { %2256 = vst [vmem:[%s526_s21 + $0x8] sm:$0xff] %v2254_v1 }
 0x832   : > { %3445 = shalt.err (!%p3442_p10)
}
 0x833   : > { %s3446_s18 = scalar_lea.hbm %s4347_s27, 256  ;;  %s3450_s28 = scalar_lea.hbm %s4541_s20, 3072 }
 0x834   : > { %p3447_p8 = scmp.ne.s32.totalorder %s4347_s27, %s3446_s18  ;;  %p3451_p3 = scmp.lt.u32.totalorder %s4347_s27, %s4541_s20 }
 0x835   : > { %p3452_p0 = scmp.lt.u32.totalorder %s3450_s28, %s3446_s18  ;;  %p3454_p1 = scmp.lt.u32.totalorder %s3446_s18, %s4347_s27 }
 0x836   : > { %p3448_p2 = pnand %p3447_p8, %p4542_p5 }
 0x837   : > { %p3453_p13 = por %p3452_p0, %p3451_p3 }
 0x838   : > { %p3449_p9 = pneg %p3448_p2 }
 0x839   : > { %p3455_p6 = por %p3454_p1, %p3453_p13 }
 0x83b   : > { %p3456_p11 = pnand %p3455_p6, %p3449_p9 }
 0x83d   : > { %3459 = shalt.err (!%p3456_p11)
}
 0x83e   : > { %s3608_s22 = smov 128   ;;  %s3609_s17 = smov 768  }
 0x83f   : > { %s3610_s23 = smov 8  }
 0x840   : > { %2851 = dma.vmem_to_hbm [thread:$0]  (%p4542_p5), %s4342_s16, 256, %s4347_s27, %s4351_s19, %s3608_s22, %s3609_s17, %s3610_s23  }
 0x841 PF: > { %s4543_s5 = sld [smem:[#allocation29_spill]]  ;;  %s4544_s15 = sld [smem:[#allocation20_spill]] }
 0x842   : > { %s4545_s21 = sld [smem:[#allocation37_spill]] }
 0x847   : > { %p2880_p7 = scmp.ge.s32.totalorder %s4543_s5, 2  ;;  %s2287_s10 = sand.u32 1, %s4544_s15  }
 0x848   : > { %p4546_p4 = scmp.ne.s32.totalorder %s4545_s21, 0  ;;  %s2288_s1 = scalar_lea.sflag [#allocation4], %s2287_s10 }
 0x84a   : > { %p2876_p12 = pnand %p2880_p7, %p4546_p4 }
 0x84c   : > { %3533 = dma.done.wait (!%p2876_p12), %s2288_s1, 256  }
 0x84d   : > { %3535 = vsyncadd (!%p2876_p12), %s2288_s1, 4294967040  ;;  %s32_s14 = sadd.s32 1, %s4543_s5   ;;  %s4548_s24 = sld [smem:[#allocation21_spill]] }
 0x84e   : > { %p4380_p10 = scmp.ge.s32.totalorder %s32_s14, 14   ;;  %s4549_s7 = sld [smem:[#allocation22_spill]] }
 0x84f   : > { %s4550_s26 = sld [smem:[#allocation35_spill]]  ;;  %s4551_s27 = sld [smem:[#allocation23_spill]] }
 0x850   : > { %s4552_s28 = sld [smem:[#allocation24_spill]]  ;;  %s4553_s29 = sld [smem:[#allocation38_spill]] }
 0x851   : > { %s4554_s30 = sld [smem:[#allocation25_spill]]  ;;  %s4555_s8 = sld [smem:[#allocation26_spill]] }
 0x852   : > { %s4556_s9 = sld [smem:[#allocation33_spill]]  ;;  %s4557_s16 = sld [smem:[#allocation31_spill]] }
 0x853   : > { %s4558_s19 = sld [smem:[#allocation32_spill]]  ;;  %s4561_s10 = smov %s3582_s12 }
 0x854   : > { %s4560_s25 = smov %s4549_s7  ;;  %s4562_s11 = smov %s3586_s13 }
 0x855   :  { %31 = sbr.rel (!%p4380_p10) target bundleno = 21 (0x15), region = 165 }
 0x858   : > { %s4563_s12 = smov %s4557_s16 }
 0x859   : > { %s4564_s13 = smov %s4558_s19 }
 0x85c   :  { %2293 = vsyncpa [#allocation3], 1 }
 0x85d   :  { %2295 = vsyncpa [#allocation3 + $0x1], 1 }
 0x85e   :  { %2296 = vsyncpa [#allocation6], 1 }
 0x85f   :  { %2298 = vsyncpa [#allocation6 + $0x1], 1 }
 0x860   :  { %2299 = vsyncpa [#allocation9], 1 }
 0x861   :  { %2301 = vsyncpa [#allocation9 + $0x1], 1 }
 0x862   :  { %2302 = vsyncpa [#allocation12], 1 }
 0x863   :  { %2304 = vsyncpa [#allocation12 + $0x1], 1 }
 0x864   :  { %2305 = vsyncpa [#allocation4], 1 }
 0x865   :  { %2307 = vsyncpa [#allocation4 + $0x1], 1 }

</bundles_post_ra>
